<compile_context>
chip_gen: v6e
topology: v6e:2x2x1
jax: 0.10.0
libtpu: 0.0.40
codegen_flags: <defaults>
</compile_context>

<pallas_src>
import functools

import jax
import jax.numpy as jnp
import numpy as np
from jax.experimental import pallas as pl
from jax.experimental.pallas import tpu as pltpu

LAYER_GIN = 4
BN_EPS = 1e-5


def _round_up(v, m):
    return ((v + m - 1) // m) * m


# ----------------------------------------------------------------------------------- #
# Kernel: whole GIN forward (4 layers) in one invocation, everything VMEM-resident.
# ----------------------------------------------------------------------------------- #
def _gin_kernel(x_ref, a_ref, p_ref, w1_ref, b1_ref, w2_ref, b2_ref,
                node_pool_ref, gpool_ref):
    a = a_ref[...]                       # [NP, NP] bf16, mean-normalized adjacency + I
    node_pool_ref[...] = jnp.zeros_like(node_pool_ref)
    h_bf = x_ref[...]                    # [NP, HP] bf16 layer-0 features (zero-padded)

    for layer in range(LAYER_GIN):       # static unroll (4 layers)
        # message passing: (1 + eps) * h_i + mean_{j->i} h_j (eps=0, +I folded into A)
        z = jnp.dot(a, h_bf, preferred_element_type=jnp.float32)
        # Linear1 with BatchNorm folded in, then ReLU
        y = jnp.dot(z.astype(jnp.bfloat16), w1_ref[layer],
                    preferred_element_type=jnp.float32) + b1_ref[layer]
        y = jnp.maximum(y, 0.0)
        # Linear2
        h = jnp.dot(y.astype(jnp.bfloat16), w2_ref[layer],
                    preferred_element_type=jnp.float32) + b2_ref[layer]
        node_pool_ref[...] += h          # accumulate straight into the output ref
        if layer + 1 < LAYER_GIN:
            h_bf = h.astype(jnp.bfloat16)  # single bf16 cast per layer, reused next iter

    # fused graph pooling: sum_l P @ h_l == P @ sum_l h_l (one matmul, not one per layer)
    gpool_ref[...] = jnp.dot(p_ref[...],
                             node_pool_ref[...].astype(jnp.bfloat16),
                             preferred_element_type=jnp.float32)


# ----------------------------------------------------------------------------------- #
# Host-side preprocessing: dense A / P, BN folding, bf16 casts, (128,128)/(8,) padding.
# jit-traceable (all dims static); no device->host sync.
# ----------------------------------------------------------------------------------- #
def _preprocess(x, edge_index, batch, params, in_dim, hidden_dim, num_graphs):
    N = x.shape[0]
    G = num_graphs
    L = LAYER_GIN
    NP = _round_up(max(N, 128), 128)          # lane-dense adjacency / dense MXU tiles
    HP = _round_up(max(hidden_dim, 128), 128)  # lane-dense outputs / MXU width
    GP = _round_up(max(G, 8), 8)               # unmasked gpool stores

    src, dst = edge_index[0], edge_index[1]
    # mean-normalized dense adjacency over incoming edges (source_to_target), plus I
    a_raw = jnp.zeros((N, N), jnp.float32).at[dst, src].add(1.0)
    deg = a_raw.sum(axis=1, keepdims=True)
    A = a_raw / jnp.maximum(deg, 1.0) + jnp.eye(N, dtype=jnp.float32)
    A_pad = jnp.zeros((NP, NP), jnp.float32).at[:N, :N].set(A).astype(jnp.bfloat16)

    # global mean-pool matrix (zero columns for padded rows -> padding never pollutes gpool)
    p_raw = jnp.zeros((G, N), jnp.float32).at[batch, jnp.arange(N)].add(1.0)
    P = p_raw / jnp.maximum(p_raw.sum(axis=1, keepdims=True), 1.0)
    P_pad = jnp.zeros((GP, NP), jnp.float32).at[:G, :N].set(P).astype(jnp.bfloat16)

    # layer-0 features: zero-pad feature dim to HP, node dim to NP
    x_pad = jnp.zeros((NP, HP), jnp.float32).at[:N, :in_dim].set(x).astype(jnp.bfloat16)

    W1, b1, gamma, beta, rm, rv, W2, b2 = params
    # fold eval-mode BatchNorm1d into Linear1
    scale = gamma * jax.lax.rsqrt(rv + BN_EPS)          # [L, 1, H]
    W1f = W1 * scale                                    # per-output-column scale
    b1f = (b1 - rm) * scale + beta

    H = hidden_dim
    # pad weights so padded feature columns of h stay exactly zero through all layers
    W1p = jnp.zeros((L, HP, HP), jnp.float32).at[:, :H, :H].set(W1f).astype(jnp.bfloat16)
    b1p = jnp.zeros((L, 1, HP), jnp.float32).at[:, :, :H].set(b1f)
    W2p = jnp.zeros((L, HP, HP), jnp.float32).at[:, :H, :H].set(W2).astype(jnp.bfloat16)
    b2p = jnp.zeros((L, 1, HP), jnp.float32).at[:, :, :H].set(b2)

    return (x_pad, A_pad, P_pad, W1p, b1p, W2p, b2p), (N, G, NP, HP, GP)


def _footprints(NP, HP, GP, L):
    """(vmem bytes incl. intermediates, hbm bytes moved, flops) for the kernel."""
    in_bytes = (NP * NP + GP * NP + NP * HP + 2 * L * HP * HP) * 2 \
               + 2 * L * 8 * HP * 4                      # biases (sublane-padded)
    out_bytes = (NP * HP + GP * HP) * 4
    tmp_bytes = 3 * NP * HP * 4                          # live f32 h / z / y tiles
    vmem = int(1.25 * (in_bytes + out_bytes + tmp_bytes)) + (2 << 20)
    flops = L * (2 * NP * NP * HP + 4 * NP * HP * HP) + 2 * GP * NP * HP
    return vmem, in_bytes + out_bytes, flops


@functools.partial(jax.jit, static_argnames=("in_dim", "hidden_dim", "num_graphs"))
def gin_forward(x, edge_index, batch, params, *, in_dim, hidden_dim, num_graphs):
    ops, (N, G, NP, HP, GP) = _preprocess(
        x, edge_index, batch, params, in_dim, hidden_dim, num_graphs)
    x_pad, A_pad, P_pad, W1p, b1p, W2p, b2p = ops

    vmem_bytes, hbm_bytes, flops = _footprints(NP, HP, GP, LAYER_GIN)
    # At least the default scoped limit; cap below physical (128 MiB v5e/v6e, 64 MiB v7x
    # -> see the streaming TODO above once A alone approaches that ceiling).
    vmem_limit = min(max(vmem_bytes, 32 << 20), 96 << 20)

    out_shape = (jax.ShapeDtypeStruct((NP, HP), jnp.float32),
                 jax.ShapeDtypeStruct((GP, HP), jnp.float32))
    vmem = pl.BlockSpec(memory_space=pltpu.MemorySpace.VMEM)

    node_pool, gpool = pl.pallas_call(
        _gin_kernel,
        out_shape=out_shape,
        in_specs=[vmem] * 7,
        out_specs=(vmem, vmem),
        compiler_params=pltpu.CompilerParams(vmem_limit_bytes=vmem_limit),
        cost_estimate=pl.CostEstimate(flops=flops, transcendentals=0,
                                      bytes_accessed=hbm_bytes),
    )(x_pad, A_pad, P_pad, W1p, b1p, W2p, b2p)

    return node_pool[:N, :hidden_dim], gpool[:G, :hidden_dim]


# ----------------------------------------------------------------------------------- #
# Parameters (torch-equivalent, un-fused) and references.
# ----------------------------------------------------------------------------------- #
def make_params(key, in_dim, hidden_dim):
    """Deterministic params. Linear weights stored as [in, out] (y = x @ W + b)."""
    H, L = hidden_dim, LAYER_GIN
    keys = jax.random.split(key, 8 * L)

    w1 = []
    for l in range(L):
        d_in = in_dim if l == 0 else H
        w = 0.1 * jax.random.normal(keys[8 * l + 0], (d_in, H), jnp.float32)
        # pad layer-0 weight rows with zeros so padded input columns contribute nothing
        w1.append(jnp.zeros((H, H), jnp.float32).at[:d_in, :].set(w))
    W1 = jnp.stack(w1)                                                          # [L,H,H]
    b1 = jnp.stack([0.05 * jax.random.normal(keys[8 * l + 1], (1, H)) for l in range(L)])
    W2 = jnp.stack([0.1 * jax.random.normal(keys[8 * l + 2], (H, H)) for l in range(L)])
    b2 = jnp.stack([0.05 * jax.random.normal(keys[8 * l + 3], (1, H)) for l in range(L)])
    # non-trivial eval-mode BatchNorm stats/affine (so the host-side folding is exercised)
    gamma = jnp.stack([1.0 + 0.1 * jax.random.normal(keys[8 * l + 4], (1, H)) for l in range(L)])
    beta = jnp.stack([0.05 * jax.random.normal(keys[8 * l + 5], (1, H)) for l in range(L)])
    rm = jnp.stack([0.1 * jax.random.normal(keys[8 * l + 6], (1, H)) for l in range(L)])
    rv = jnp.stack([0.5 + jax.random.uniform(keys[8 * l + 7], (1, H)) for l in range(L)])
    return (W1, b1, gamma, beta, rm, rv, W2, b2)


def _kernel_math_reference(x_bf, A_bf, P_bf, W1p, b1p, W2p, b2p):
    """Pure-JAX replica of the kernel dataflow (same bf16 casts, f32 accumulation)."""
    node_pool = jnp.zeros((x_bf.shape[0], W1p.shape[-1]), jnp.float32)
    h_bf = x_bf
    for l in range(LAYER_GIN):
        z = jnp.dot(A_bf, h_bf, preferred_element_type=jnp.float32)
        y = jnp.dot(z.astype(jnp.bfloat16), W1p[l], preferred_element_type=jnp.float32) + b1p[l]
        y = jnp.maximum(y, 0.0)
        h = jnp.dot(y.astype(jnp.bfloat16), W2p[l], preferred_element_type=jnp.float32) + b2p[l]
        node_pool = node_pool + h
        h_bf = h.astype(jnp.bfloat16)
    gpool = jnp.dot(P_bf, node_pool.astype(jnp.bfloat16), preferred_element_type=jnp.float32)
    return node_pool, gpool


def _module_reference_f32(x, edge_index, batch, params, in_dim, hidden_dim):
    """Original-module semantics in full f32 (un-fused BN, explicit self term)."""
    N = x.shape[0]
    G = int(batch.max()) + 1
    W1, b1, gamma, beta, rm, rv, W2, b2 = params
    a_raw = jnp.zeros((N, N), jnp.float32).at[edge_index[1], edge_index[0]].add(1.0)
    A = a_raw / jnp.maximum(a_raw.sum(axis=1, keepdims=True), 1.0)
    p_raw = jnp.zeros((G, N), jnp.float32).at[batch, jnp.arange(N)].add(1.0)
    P = p_raw / jnp.maximum(p_raw.sum(axis=1, keepdims=True), 1.0)
    h = jnp.zeros((N, hidden_dim), jnp.float32).at[:, :in_dim].set(x)
    node_pool, gpool = 0.0, 0.0
    for l in range(LAYER_GIN):
        z = h + A @ h
        y = z @ W1[l] + b1[l]
        y = (y - rm[l]) * jax.lax.rsqrt(rv[l] + BN_EPS) * gamma[l] + beta[l]
        y = jnp.maximum(y, 0.0)
        h = y @ W2[l] + b2[l]
        node_pool = node_pool + h
        gpool = gpool + P @ h
    return node_pool, gpool


if __name__ == "__main__":
    key = jax.random.PRNGKey(0)
    k_x, k_p = jax.random.split(key, 2)

    in_dim, hidden_dim = 8, 32
    N, num_graphs = 12, 3
    # 3 graphs: nodes 0-3 -> graph 0, 4-7 -> graph 1, 8-11 -> graph 2
    batch = jnp.array([0, 0, 0, 0, 1, 1, 1, 1, 2, 2, 2, 2], dtype=jnp.int32)

    x = jax.random.normal(k_x, (N, in_dim), jnp.float32)
    # random directed edges kept within each graph (so pooling is meaningful)
    rng = np.random.RandomState(0)
    src = np.concatenate([rng.randint(4 * g, 4 * g + 4, size=13) for g in range(3)])
    dst = np.concatenate([rng.randint(4 * g, 4 * g + 4, size=13) for g in range(3)])
    edge_index = jnp.stack([jnp.asarray(src, jnp.int32), jnp.asarray(dst, jnp.int32)])

    params = make_params(k_p, in_dim, hidden_dim)

    node_pool, gpool = gin_forward(x, edge_index, batch, params,
                                   in_dim=in_dim, hidden_dim=hidden_dim,
                                   num_graphs=num_graphs)
    jax.block_until_ready((node_pool, gpool))

    # 1) tight check: Pallas kernel vs. identical-math pure-JAX replica (same bf16 casts)
    ops, (Nn, G, NP, HP, GP) = _preprocess(x, edge_index, batch, params,
                                           in_dim, hidden_dim, num_graphs)
    ref_np_p, ref_gp_p = _kernel_math_reference(*ops)
    assert jnp.allclose(node_pool, ref_np_p[:Nn, :hidden_dim], atol=1e-3, rtol=1e-3)
    assert jnp.allclose(gpool, ref_gp_p[:G, :hidden_dim], atol=1e-3, rtol=1e-3)

    # 2) semantics check: vs. full-f32 original-module reference (bf16-appropriate tolerance)
    ref_np, ref_gp = _module_reference_f32(x, edge_index, batch, params, in_dim, hidden_dim)
    assert jnp.allclose(node_pool, ref_np, atol=1e-1, rtol=1e-1)
    assert jnp.allclose(gpool, ref_gp, atol=1e-1, rtol=1e-1)

    print("KERNEL_OK")
</pallas_src>

<mosaic_0001>
module attributes {stable_mosaic.version = 11 : i64} {
  func.func @_gin_kernel(%arg0: memref<128x128xbf16, #tpu.memory_space<vmem>>, %arg1: memref<128x128xbf16, #tpu.memory_space<vmem>>, %arg2: memref<8x128xbf16, #tpu.memory_space<vmem>>, %arg3: memref<4x128x128xbf16, #tpu.memory_space<vmem>>, %arg4: memref<4x1x128xf32, #tpu.memory_space<vmem>>, %arg5: memref<4x128x128xbf16, #tpu.memory_space<vmem>>, %arg6: memref<4x1x128xf32, #tpu.memory_space<vmem>>, %arg7: memref<128x128xf32, #tpu.memory_space<vmem>>, %arg8: memref<8x128xf32, #tpu.memory_space<vmem>>) attributes {dimension_semantics = [], scalar_prefetch = 0 : i64, scratch_operands = 0 : i64, tpu.core_type = #tpu.core_type<tc>} {
    %c0 = arith.constant 0 : index
    %c0_0 = arith.constant 0 : index
    %0 = vector.load %arg1[%c0, %c0_0] : memref<128x128xbf16, #tpu.memory_space<vmem>>, vector<128x128xbf16>
    %cst = arith.constant 0.000000e+00 : f32
    %1 = vector.broadcast %cst : f32 to vector<128x128xf32>
    %c0_1 = arith.constant 0 : index
    %c0_2 = arith.constant 0 : index
    %2 = vector.load %arg7[%c0_1, %c0_2] : memref<128x128xf32, #tpu.memory_space<vmem>>, vector<128x128xf32>
    tpu.vector_store %arg7[%c0_1, %c0_2], %1 {strides = array<i32>} : memref<128x128xf32, #tpu.memory_space<vmem>>, vector<128x128xf32>,
    %c0_3 = arith.constant 0 : index
    %c0_4 = arith.constant 0 : index
    %3 = vector.load %arg0[%c0_3, %c0_4] : memref<128x128xbf16, #tpu.memory_space<vmem>>, vector<128x128xbf16>
    %cst_5 = arith.constant dense<0.000000e+00> : vector<128x128xf32>
    %4 = tpu.matmul %0, %3, %cst_5 {dimension_numbers = #tpu.dot_dimension_numbers<[1], [0], [0], [1], [0, 0, 1, 1], [], []>} : vector<128x128xbf16>, vector<128x128xbf16>, vector<128x128xf32> -> vector<128x128xf32>
    %5 = arith.truncf %4 : vector<128x128xf32> to vector<128x128xbf16>
    %c0_6 = arith.constant 0 : index
    %c0_7 = arith.constant 0 : index
    %c0_8 = arith.constant 0 : index
    %6 = vector.load %arg3[%c0_6, %c0_7, %c0_8] : memref<4x128x128xbf16, #tpu.memory_space<vmem>>, vector<1x128x128xbf16>
    %7 = vector.shape_cast %6 : vector<1x128x128xbf16> to vector<128x128xbf16>
    %cst_9 = arith.constant dense<0.000000e+00> : vector<128x128xf32>
    %8 = tpu.matmul %5, %7, %cst_9 {dimension_numbers = #tpu.dot_dimension_numbers<[1], [0], [0], [1], [0, 0, 1, 1], [], []>} : vector<128x128xbf16>, vector<128x128xbf16>, vector<128x128xf32> -> vector<128x128xf32>
    %c0_10 = arith.constant 0 : index
    %c0_11 = arith.constant 0 : index
    %c0_12 = arith.constant 0 : index
    %9 = vector.load %arg4[%c0_10, %c0_11, %c0_12] : memref<4x1x128xf32, #tpu.memory_space<vmem>>, vector<1x1x128xf32>
    %10 = vector.shape_cast %9 : vector<1x1x128xf32> to vector<1x128xf32>
    %11 = vector.broadcast %10 : vector<1x128xf32> to vector<128x128xf32>
    %12 = arith.addf %8, %11 : vector<128x128xf32>
    %cst_13 = arith.constant 0.000000e+00 : f32
    %13 = vector.broadcast %cst_13 : f32 to vector<128x128xf32>
    %14 = arith.maximumf %12, %13 : vector<128x128xf32>
    %15 = arith.truncf %14 : vector<128x128xf32> to vector<128x128xbf16>
    %c0_14 = arith.constant 0 : index
    %c0_15 = arith.constant 0 : index
    %c0_16 = arith.constant 0 : index
    %16 = vector.load %arg5[%c0_14, %c0_15, %c0_16] : memref<4x128x128xbf16, #tpu.memory_space<vmem>>, vector<1x128x128xbf16>
    %17 = vector.shape_cast %16 : vector<1x128x128xbf16> to vector<128x128xbf16>
    %cst_17 = arith.constant dense<0.000000e+00> : vector<128x128xf32>
    %18 = tpu.matmul %15, %17, %cst_17 {dimension_numbers = #tpu.dot_dimension_numbers<[1], [0], [0], [1], [0, 0, 1, 1], [], []>} : vector<128x128xbf16>, vector<128x128xbf16>, vector<128x128xf32> -> vector<128x128xf32>
    %c0_18 = arith.constant 0 : index
    %c0_19 = arith.constant 0 : index
    %c0_20 = arith.constant 0 : index
    %19 = vector.load %arg6[%c0_18, %c0_19, %c0_20] : memref<4x1x128xf32, #tpu.memory_space<vmem>>, vector<1x1x128xf32>
    %20 = vector.shape_cast %19 : vector<1x1x128xf32> to vector<1x128xf32>
    %21 = vector.broadcast %20 : vector<1x128xf32> to vector<128x128xf32>
    %22 = arith.addf %18, %21 : vector<128x128xf32>
    %c0_21 = arith.constant 0 : index
    %c0_22 = arith.constant 0 : index
    %23 = vector.load %arg7[%c0_21, %c0_22] : memref<128x128xf32, #tpu.memory_space<vmem>>, vector<128x128xf32>
    %24 = arith.addf %23, %22 : vector<128x128xf32>
    %c0_23 = arith.constant 0 : index
    %c0_24 = arith.constant 0 : index
    %25 = vector.load %arg7[%c0_23, %c0_24] : memref<128x128xf32, #tpu.memory_space<vmem>>, vector<128x128xf32>
    tpu.vector_store %arg7[%c0_23, %c0_24], %24 {strides = array<i32>} : memref<128x128xf32, #tpu.memory_space<vmem>>, vector<128x128xf32>,
    %26 = arith.truncf %22 : vector<128x128xf32> to vector<128x128xbf16>
    %cst_25 = arith.constant dense<0.000000e+00> : vector<128x128xf32>
    %27 = tpu.matmul %0, %26, %cst_25 {dimension_numbers = #tpu.dot_dimension_numbers<[1], [0], [0], [1], [0, 0, 1, 1], [], []>} : vector<128x128xbf16>, vector<128x128xbf16>, vector<128x128xf32> -> vector<128x128xf32>
    %28 = arith.truncf %27 : vector<128x128xf32> to vector<128x128xbf16>
    %c1 = arith.constant 1 : index
    %c0_26 = arith.constant 0 : index
    %c0_27 = arith.constant 0 : index
    %29 = vector.load %arg3[%c1, %c0_26, %c0_27] : memref<4x128x128xbf16, #tpu.memory_space<vmem>>, vector<1x128x128xbf16>
    %30 = vector.shape_cast %29 : vector<1x128x128xbf16> to vector<128x128xbf16>
    %cst_28 = arith.constant dense<0.000000e+00> : vector<128x128xf32>
    %31 = tpu.matmul %28, %30, %cst_28 {dimension_numbers = #tpu.dot_dimension_numbers<[1], [0], [0], [1], [0, 0, 1, 1], [], []>} : vector<128x128xbf16>, vector<128x128xbf16>, vector<128x128xf32> -> vector<128x128xf32>
    %c1_29 = arith.constant 1 : index
    %c0_30 = arith.constant 0 : index
    %c0_31 = arith.constant 0 : index
    %32 = vector.load %arg4[%c1_29, %c0_30, %c0_31] : memref<4x1x128xf32, #tpu.memory_space<vmem>>, vector<1x1x128xf32>
    %33 = vector.shape_cast %32 : vector<1x1x128xf32> to vector<1x128xf32>
    %34 = vector.broadcast %33 : vector<1x128xf32> to vector<128x128xf32>
    %35 = arith.addf %31, %34 : vector<128x128xf32>
    %cst_32 = arith.constant 0.000000e+00 : f32
    %36 = vector.broadcast %cst_32 : f32 to vector<128x128xf32>
    %37 = arith.maximumf %35, %36 : vector<128x128xf32>
    %38 = arith.truncf %37 : vector<128x128xf32> to vector<128x128xbf16>
    %c1_33 = arith.constant 1 : index
    %c0_34 = arith.constant 0 : index
    %c0_35 = arith.constant 0 : index
    %39 = vector.load %arg5[%c1_33, %c0_34, %c0_35] : memref<4x128x128xbf16, #tpu.memory_space<vmem>>, vector<1x128x128xbf16>
    %40 = vector.shape_cast %39 : vector<1x128x128xbf16> to vector<128x128xbf16>
    %cst_36 = arith.constant dense<0.000000e+00> : vector<128x128xf32>
    %41 = tpu.matmul %38, %40, %cst_36 {dimension_numbers = #tpu.dot_dimension_numbers<[1], [0], [0], [1], [0, 0, 1, 1], [], []>} : vector<128x128xbf16>, vector<128x128xbf16>, vector<128x128xf32> -> vector<128x128xf32>
    %c1_37 = arith.constant 1 : index
    %c0_38 = arith.constant 0 : index
    %c0_39 = arith.constant 0 : index
    %42 = vector.load %arg6[%c1_37, %c0_38, %c0_39] : memref<4x1x128xf32, #tpu.memory_space<vmem>>, vector<1x1x128xf32>
    %43 = vector.shape_cast %42 : vector<1x1x128xf32> to vector<1x128xf32>
    %44 = vector.broadcast %43 : vector<1x128xf32> to vector<128x128xf32>
    %45 = arith.addf %41, %44 : vector<128x128xf32>
    %c0_40 = arith.constant 0 : index
    %c0_41 = arith.constant 0 : index
    %46 = vector.load %arg7[%c0_40, %c0_41] : memref<128x128xf32, #tpu.memory_space<vmem>>, vector<128x128xf32>
    %47 = arith.addf %46, %45 : vector<128x128xf32>
    %c0_42 = arith.constant 0 : index
    %c0_43 = arith.constant 0 : index
    %48 = vector.load %arg7[%c0_42, %c0_43] : memref<128x128xf32, #tpu.memory_space<vmem>>, vector<128x128xf32>
    tpu.vector_store %arg7[%c0_42, %c0_43], %47 {strides = array<i32>} : memref<128x128xf32, #tpu.memory_space<vmem>>, vector<128x128xf32>,
    %49 = arith.truncf %45 : vector<128x128xf32> to vector<128x128xbf16>
    %cst_44 = arith.constant dense<0.000000e+00> : vector<128x128xf32>
    %50 = tpu.matmul %0, %49, %cst_44 {dimension_numbers = #tpu.dot_dimension_numbers<[1], [0], [0], [1], [0, 0, 1, 1], [], []>} : vector<128x128xbf16>, vector<128x128xbf16>, vector<128x128xf32> -> vector<128x128xf32>
    %51 = arith.truncf %50 : vector<128x128xf32> to vector<128x128xbf16>
    %c2 = arith.constant 2 : index
    %c0_45 = arith.constant 0 : index
    %c0_46 = arith.constant 0 : index
    %52 = vector.load %arg3[%c2, %c0_45, %c0_46] : memref<4x128x128xbf16, #tpu.memory_space<vmem>>, vector<1x128x128xbf16>
    %53 = vector.shape_cast %52 : vector<1x128x128xbf16> to vector<128x128xbf16>
    %cst_47 = arith.constant dense<0.000000e+00> : vector<128x128xf32>
    %54 = tpu.matmul %51, %53, %cst_47 {dimension_numbers = #tpu.dot_dimension_numbers<[1], [0], [0], [1], [0, 0, 1, 1], [], []>} : vector<128x128xbf16>, vector<128x128xbf16>, vector<128x128xf32> -> vector<128x128xf32>
    %c2_48 = arith.constant 2 : index
    %c0_49 = arith.constant 0 : index
    %c0_50 = arith.constant 0 : index
    %55 = vector.load %arg4[%c2_48, %c0_49, %c0_50] : memref<4x1x128xf32, #tpu.memory_space<vmem>>, vector<1x1x128xf32>
    %56 = vector.shape_cast %55 : vector<1x1x128xf32> to vector<1x128xf32>
    %57 = vector.broadcast %56 : vector<1x128xf32> to vector<128x128xf32>
    %58 = arith.addf %54, %57 : vector<128x128xf32>
    %cst_51 = arith.constant 0.000000e+00 : f32
    %59 = vector.broadcast %cst_51 : f32 to vector<128x128xf32>
    %60 = arith.maximumf %58, %59 : vector<128x128xf32>
    %61 = arith.truncf %60 : vector<128x128xf32> to vector<128x128xbf16>
    %c2_52 = arith.constant 2 : index
    %c0_53 = arith.constant 0 : index
    %c0_54 = arith.constant 0 : index
    %62 = vector.load %arg5[%c2_52, %c0_53, %c0_54] : memref<4x128x128xbf16, #tpu.memory_space<vmem>>, vector<1x128x128xbf16>
    %63 = vector.shape_cast %62 : vector<1x128x128xbf16> to vector<128x128xbf16>
    %cst_55 = arith.constant dense<0.000000e+00> : vector<128x128xf32>
    %64 = tpu.matmul %61, %63, %cst_55 {dimension_numbers = #tpu.dot_dimension_numbers<[1], [0], [0], [1], [0, 0, 1, 1], [], []>} : vector<128x128xbf16>, vector<128x128xbf16>, vector<128x128xf32> -> vector<128x128xf32>
    %c2_56 = arith.constant 2 : index
    %c0_57 = arith.constant 0 : index
    %c0_58 = arith.constant 0 : index
    %65 = vector.load %arg6[%c2_56, %c0_57, %c0_58] : memref<4x1x128xf32, #tpu.memory_space<vmem>>, vector<1x1x128xf32>
    %66 = vector.shape_cast %65 : vector<1x1x128xf32> to vector<1x128xf32>
    %67 = vector.broadcast %66 : vector<1x128xf32> to vector<128x128xf32>
    %68 = arith.addf %64, %67 : vector<128x128xf32>
    %c0_59 = arith.constant 0 : index
    %c0_60 = arith.constant 0 : index
    %69 = vector.load %arg7[%c0_59, %c0_60] : memref<128x128xf32, #tpu.memory_space<vmem>>, vector<128x128xf32>
    %70 = arith.addf %69, %68 : vector<128x128xf32>
    %c0_61 = arith.constant 0 : index
    %c0_62 = arith.constant 0 : index
    %71 = vector.load %arg7[%c0_61, %c0_62] : memref<128x128xf32, #tpu.memory_space<vmem>>, vector<128x128xf32>
    tpu.vector_store %arg7[%c0_61, %c0_62], %70 {strides = array<i32>} : memref<128x128xf32, #tpu.memory_space<vmem>>, vector<128x128xf32>,
    %72 = arith.truncf %68 : vector<128x128xf32> to vector<128x128xbf16>
    %cst_63 = arith.constant dense<0.000000e+00> : vector<128x128xf32>
    %73 = tpu.matmul %0, %72, %cst_63 {dimension_numbers = #tpu.dot_dimension_numbers<[1], [0], [0], [1], [0, 0, 1, 1], [], []>} : vector<128x128xbf16>, vector<128x128xbf16>, vector<128x128xf32> -> vector<128x128xf32>
    %74 = arith.truncf %73 : vector<128x128xf32> to vector<128x128xbf16>
    %c3 = arith.constant 3 : index
    %c0_64 = arith.constant 0 : index
    %c0_65 = arith.constant 0 : index
    %75 = vector.load %arg3[%c3, %c0_64, %c0_65] : memref<4x128x128xbf16, #tpu.memory_space<vmem>>, vector<1x128x128xbf16>
    %76 = vector.shape_cast %75 : vector<1x128x128xbf16> to vector<128x128xbf16>
    %cst_66 = arith.constant dense<0.000000e+00> : vector<128x128xf32>
    %77 = tpu.matmul %74, %76, %cst_66 {dimension_numbers = #tpu.dot_dimension_numbers<[1], [0], [0], [1], [0, 0, 1, 1], [], []>} : vector<128x128xbf16>, vector<128x128xbf16>, vector<128x128xf32> -> vector<128x128xf32>
    %c3_67 = arith.constant 3 : index
    %c0_68 = arith.constant 0 : index
    %c0_69 = arith.constant 0 : index
    %78 = vector.load %arg4[%c3_67, %c0_68, %c0_69] : memref<4x1x128xf32, #tpu.memory_space<vmem>>, vector<1x1x128xf32>
    %79 = vector.shape_cast %78 : vector<1x1x128xf32> to vector<1x128xf32>
    %80 = vector.broadcast %79 : vector<1x128xf32> to vector<128x128xf32>
    %81 = arith.addf %77, %80 : vector<128x128xf32>
    %cst_70 = arith.constant 0.000000e+00 : f32
    %82 = vector.broadcast %cst_70 : f32 to vector<128x128xf32>
    %83 = arith.maximumf %81, %82 : vector<128x128xf32>
    %84 = arith.truncf %83 : vector<128x128xf32> to vector<128x128xbf16>
    %c3_71 = arith.constant 3 : index
    %c0_72 = arith.constant 0 : index
    %c0_73 = arith.constant 0 : index
    %85 = vector.load %arg5[%c3_71, %c0_72, %c0_73] : memref<4x128x128xbf16, #tpu.memory_space<vmem>>, vector<1x128x128xbf16>
    %86 = vector.shape_cast %85 : vector<1x128x128xbf16> to vector<128x128xbf16>
    %cst_74 = arith.constant dense<0.000000e+00> : vector<128x128xf32>
    %87 = tpu.matmul %84, %86, %cst_74 {dimension_numbers = #tpu.dot_dimension_numbers<[1], [0], [0], [1], [0, 0, 1, 1], [], []>} : vector<128x128xbf16>, vector<128x128xbf16>, vector<128x128xf32> -> vector<128x128xf32>
    %c3_75 = arith.constant 3 : index
    %c0_76 = arith.constant 0 : index
    %c0_77 = arith.constant 0 : index
    %88 = vector.load %arg6[%c3_75, %c0_76, %c0_77] : memref<4x1x128xf32, #tpu.memory_space<vmem>>, vector<1x1x128xf32>
    %89 = vector.shape_cast %88 : vector<1x1x128xf32> to vector<1x128xf32>
    %90 = vector.broadcast %89 : vector<1x128xf32> to vector<128x128xf32>
    %91 = arith.addf %87, %90 : vector<128x128xf32>
    %c0_78 = arith.constant 0 : index
    %c0_79 = arith.constant 0 : index
    %92 = vector.load %arg7[%c0_78, %c0_79] : memref<128x128xf32, #tpu.memory_space<vmem>>, vector<128x128xf32>
    %93 = arith.addf %92, %91 : vector<128x128xf32>
    %c0_80 = arith.constant 0 : index
    %c0_81 = arith.constant 0 : index
    %94 = vector.load %arg7[%c0_80, %c0_81] : memref<128x128xf32, #tpu.memory_space<vmem>>, vector<128x128xf32>
    tpu.vector_store %arg7[%c0_80, %c0_81], %93 {strides = array<i32>} : memref<128x128xf32, #tpu.memory_space<vmem>>, vector<128x128xf32>,
    %c0_82 = arith.constant 0 : index
    %c0_83 = arith.constant 0 : index
    %95 = vector.load %arg2[%c0_82, %c0_83] : memref<8x128xbf16, #tpu.memory_space<vmem>>, vector<8x128xbf16>
    %c0_84 = arith.constant 0 : index
    %c0_85 = arith.constant 0 : index
    %96 = vector.load %arg7[%c0_84, %c0_85] : memref<128x128xf32, #tpu.memory_space<vmem>>, vector<128x128xf32>
    %97 = arith.truncf %96 : vector<128x128xf32> to vector<128x128xbf16>
    %cst_86 = arith.constant dense<0.000000e+00> : vector<8x128xf32>
    %98 = tpu.matmul %95, %97, %cst_86 {dimension_numbers = #tpu.dot_dimension_numbers<[1], [0], [0], [1], [0, 0, 1, 1], [], []>} : vector<8x128xbf16>, vector<128x128xbf16>, vector<8x128xf32> -> vector<8x128xf32>
    %c0_87 = arith.constant 0 : index
    %c0_88 = arith.constant 0 : index
    %99 = vector.load %arg8[%c0_87, %c0_88] : memref<8x128xf32, #tpu.memory_space<vmem>>, vector<8x128xf32>
    tpu.vector_store %arg8[%c0_87, %c0_88], %98 {strides = array<i32>} : memref<8x128xf32, #tpu.memory_space<vmem>>, vector<8x128xf32>,
    return
  }
}

</mosaic_0001>

<bundles_post_ra>
// kernel: gin_forward.1
= control target key start
LH: loop header
LB: loop body
LE: loop exit
PB: predicated region body
PF: predicated region fallthrough
CT: control target
= control target key end

     0   :  { %vm3221_vm0 = vmmov 0   ;;  %s3895_s0 = inlined_call_operand.vmem [shape: bf16[128,128], index: 0, kind: input, shape index: {}]   ;;  %s3896_s1 = inlined_call_operand.vmem [shape: bf16[128,128], index: 1, kind: input, shape index: {}]   ;;  %s3897_s3 = inlined_call_operand.vmem [shape: bf16[4,128,128], index: 3, kind: input, shape index: {}]   ;;  %s3898_s5 = inlined_call_operand.vmem [shape: bf16[4,128,128], index: 5, kind: input, shape index: {}]   ;;  %s3899_s4 = inlined_call_operand.vmem [shape: f32[4,1,128], index: 4, kind: input, shape index: {}]   ;;  %s3900_s6 = inlined_call_operand.vmem [shape: f32[4,1,128], index: 6, kind: input, shape index: {}]   ;;  %s3901_s7 = inlined_call_operand.vmem [shape: f32[128,128], index: 7, kind: output, shape index: {0}]   ;;  %s3902_s2 = inlined_call_operand.vmem [shape: bf16[8,128], index: 2, kind: input, shape index: {}]   ;;  %s3903_s8 = inlined_call_operand.vmem [shape: f32[8,128], index: 8, kind: output, shape index: {1}]  }
   0x1   :  { %v3132_v0 = vld [vmem:[%s3895_s0 + $0x38] sm:$0xff]   ;;  %v3133_v1 = vld [vmem:[%s3895_s0 + $0x30] sm:$0xff]   ;;  %v3134_v2 = vld [vmem:[%s3895_s0 + $0x28] sm:$0xff]  }
   0x2   :  { %2726 = vmatprep.subr.bf16.mxu0 %v3132_v0  ;;  %v3135_v3 = vld [vmem:[%s3895_s0 + $0x20] sm:$0xff]   ;;  %v3136_v5 = vld [vmem:[%s3895_s0 + $0x18] sm:$0xff]   ;;  %v3137_v6 = vld [vmem:[%s3895_s0 + $0x10] sm:$0xff]  }
   0x3   :  { %2727 = vmatpush3.bf16.msra.mxu0 %v3132_v0  ;;  %v3282_v4 = vld [vmem:[%s3896_s1] sm:$0xff]   ;;  %v3148_v7 = vld [vmem:[%s3897_s3 + $0x38] sm:$0xff]   ;;  %v3149_v8 = vld [vmem:[%s3897_s3 + $0x30] sm:$0xff]  }
   0x4   :  { %2728 = vmatprep.subr.bf16.mxu0 %v3133_v1  ;;  %2742 = vmatprep.mubr.bf16.mxu0 %v3282_v4  ;;  %v3138_v9 = vld [vmem:[%s3895_s0 + $0x8] sm:$0xff]   ;;  %v3139_v11 = vld [vmem:[%s3895_s0] sm:$0xff]   ;;  %v3152_v13 = vld [vmem:[%s3897_s3 + $0x18] sm:$0xff]  }
   0x5   :  { %2758 = vmatprep.subr.bf16.mxu1 %v3148_v7  ;;  %v3150_v10 = vld [vmem:[%s3897_s3 + $0x28] sm:$0xff]   ;;  %v3151_v12 = vld [vmem:[%s3897_s3 + $0x20] sm:$0xff]   ;;  %v3320_v15 = vld [vmem:[%s3896_s1 + $0x10] sm:$0xff]  }
   0x6   :  { %2759 = vmatpush3.bf16.msra.mxu1 %v3148_v7  ;;  %v3315_v14 = vld [vmem:[%s3896_s1 + $0x8] sm:$0xff]   ;;  %v3153_v16 = vld [vmem:[%s3897_s3 + $0x10] sm:$0xff]   ;;  %v3330_v17 = vld [vmem:[%s3896_s1 + $0x18] sm:$0xff]  }
   0x7   :  { %2729 = vmatpush3.bf16.msra.mxu0 %v3133_v1  ;;  %2760 = vmatprep.subr.bf16.mxu1 %v3149_v8  ;;  %v3335_v18 = vld [vmem:[%s3896_s1 + $0x20] sm:$0xff]   ;;  %v3342_v19 = vld [vmem:[%s3896_s1 + $0x28] sm:$0xff]   ;;  %v3347_v20 = vld [vmem:[%s3896_s1 + $0x30] sm:$0xff]  }
   0x8   :  { %2730 = vmatprep.subr.bf16.mxu0 %v3134_v2  ;;  %v3354_v21 = vld [vmem:[%s3896_s1 + $0x38] sm:$0xff]   ;;  %v3154_v22 = vld [vmem:[%s3897_s3 + $0x8] sm:$0xff]   ;;  %v3155_v23 = vld [vmem:[%s3897_s3] sm:$0xff]  }
   0x9   :  { %v3156_v24 = vld [vmem:[%s3898_s5 + $0x38] sm:$0xff]   ;;  %v3157_v25 = vld [vmem:[%s3898_s5 + $0x30] sm:$0xff]   ;;  %v3158_v26 = vld [vmem:[%s3898_s5 + $0x28] sm:$0xff]  }
   0xa   :  { %2761 = vmatpush3.bf16.msra.mxu1 %v3149_v8  ;;  %v3159_v27 = vld [vmem:[%s3898_s5 + $0x20] sm:$0xff]   ;;  %v3160_v28 = vld [vmem:[%s3898_s5 + $0x18] sm:$0xff]   ;;  %v3161_v53 = vld [vmem:[%s3898_s5 + $0x10] sm:$0xff]  }
   0xb   :  { %2731 = vmatpush3.bf16.msra.mxu0 %v3134_v2  ;;  %2762 = vmatprep.subr.bf16.mxu1 %v3150_v10  ;;  %v3162_v54 = vld [vmem:[%s3898_s5 + $0x8] sm:$0xff]   ;;  %v3163_v55 = vld [vmem:[%s3898_s5] sm:$0xff]  }
   0xc   :  { %2732 = vmatprep.subr.bf16.mxu0 %v3135_v3  ;;  %v2351_v58 = vld [vmem:[%s3899_s4] ss:$0 sm:$0xff] }
   0xe   :  { %2763 = vmatpush3.bf16.msra.mxu1 %v3150_v10 }
   0xf   :  { %2733 = vmatpush3.bf16.msra.mxu0 %v3135_v3  ;;  %2764 = vmatprep.subr.bf16.mxu1 %v3151_v12 }
  0x10   :  { %2734 = vmatprep.subr.bf16.mxu0 %v3136_v5 }
  0x12   :  { %2765 = vmatpush3.bf16.msra.mxu1 %v3151_v12 }
  0x13   :  { %2735 = vmatpush3.bf16.msra.mxu0 %v3136_v5  ;;  %2766 = vmatprep.subr.bf16.mxu1 %v3152_v13 }
  0x14   :  { %2736 = vmatprep.subr.bf16.mxu0 %v3137_v6 }
  0x16   :  { %2767 = vmatpush3.bf16.msra.mxu1 %v3152_v13 }
  0x17   :  { %2737 = vmatpush3.bf16.msra.mxu0 %v3137_v6  ;;  %2768 = vmatprep.subr.bf16.mxu1 %v3153_v16 }
  0x18   :  { %2738 = vmatprep.subr.bf16.mxu0 %v3138_v9 }
  0x1a   :  { %2769 = vmatpush3.bf16.msra.mxu1 %v3153_v16 }
  0x1b   :  { %2739 = vmatpush3.bf16.msra.mxu0 %v3138_v9  ;;  %2770 = vmatprep.subr.bf16.mxu1 %v3154_v22 }
  0x1c   :  { %2740 = vmatprep.subr.bf16.mxu0 %v3139_v11 }
  0x1e   :  { %2771 = vmatpush3.bf16.msra.mxu1 %v3154_v22 }
  0x1f   :  { %2741 = vmatpush3.bf16.msra.mxu0 %v3139_v11  ;;  %2772 = vmatprep.subr.bf16.mxu1 %v3155_v23 }
  0x20   :  { %2790 = vmatprep.subr.bf16.mxu0 %v3156_v24 }
  0x22   :  { %2743 = vmatmul.mubr.bf16.vlgmr.msra.gmra.mxu0 %v3315_v14  ;;  %2773 = vmatpush3.bf16.msra.mxu1 %v3155_v23 }
  0x23   :  { %2746 = vmatprep.mubr.bf16.mxu0 %v3320_v15  ;;  %2791 = vmatpush3.bf16.msra.mxu0 %v3156_v24 }
  0x24   :  { %2792 = vmatprep.subr.bf16.mxu0 %v3157_v25 }
  0x27   :  { %2793 = vmatpush3.bf16.msra.mxu0 %v3157_v25 }
  0x28   :  { %2794 = vmatprep.subr.bf16.mxu0 %v3158_v26 }
  0x2a   :  { %2747 = vmatmul.mubr.bf16.gmra.mxu0 %v3330_v17 }
  0x2b   :  { %2750 = vmatprep.mubr.bf16.mxu0 %v3335_v18  ;;  %2795 = vmatpush3.bf16.msra.mxu0 %v3158_v26 }
  0x2c   :  { %2796 = vmatprep.subr.bf16.mxu0 %v3159_v27 }
  0x2f   :  { %2797 = vmatpush3.bf16.msra.mxu0 %v3159_v27 }
  0x30   :  { %2798 = vmatprep.subr.bf16.mxu0 %v3160_v28 }
  0x32   :  { %2751 = vmatmul.mubr.bf16.gmra.mxu0 %v3342_v19 }
  0x33   :  { %2754 = vmatprep.mubr.bf16.mxu0 %v3347_v20  ;;  %2799 = vmatpush3.bf16.msra.mxu0 %v3160_v28 }
  0x34   :  { %2800 = vmatprep.subr.bf16.mxu0 %v3161_v53 }
  0x37   :  { %2801 = vmatpush3.bf16.msra.mxu0 %v3161_v53 }
  0x38   :  { %2802 = vmatprep.subr.bf16.mxu0 %v3162_v54 }
  0x3a   :  { %2755 = vmatmul.mubr.bf16.gmra.mxu0 %v3354_v21 }
  0x3b   :  { %2803 = vmatpush3.bf16.msra.mxu0 %v3162_v54 }
  0x3c   :  { %2804 = vmatprep.subr.bf16.mxu0 %v3163_v55 }
  0x3f   :  { %2805 = vmatpush3.bf16.msra.mxu0 %v3163_v55 }
  0xe2   :  { %v2744_v29 = vpop.f32.mrf.mxu0 }
  0xe4   :  { %v207_v30 = vpop.f32.mrf.mxu0 }
  0xe6   :  { %v2745_v31 = vpop.f32.mrf.mxu0 }
  0xe7   :  { %v271_v34 = vpack.c.bf16 %v2745_v31, %v2744_v29 }
  0xe8   :  { %v210_v32 = vpop.f32.mrf.mxu0 }
  0xe9   :  { %v270_v33 = vpack.c.bf16 %v210_v32, %v207_v30 }
  0xea   :  { %v2748_v35 = vpop.f32.mrf.mxu0 }
  0xeb   :  { %2774 = vmatprep.mubr.bf16.mxu1 %v270_v33 }
  0xec   :  { %v223_v36 = vpop.f32.mrf.mxu0  ;;  %2775 = vmatmul.mubr.bf16.vlgmr.msra.gmra.mxu1 %v271_v34 }
  0xee   :  { %v2749_v37 = vpop.f32.mrf.mxu0 }
  0xef   :  { %v273_v40 = vpack.c.bf16 %v2749_v37, %v2748_v35 }
  0xf0   :  { %v226_v38 = vpop.f32.mrf.mxu0 }
  0xf1   :  { %v272_v39 = vpack.c.bf16 %v226_v38, %v223_v36 }
  0xf2   :  { %v2752_v41 = vpop.f32.mrf.mxu0 }
  0xf3   :  { %2778 = vmatprep.mubr.bf16.mxu1 %v272_v39 }
  0xf4   :  { %v239_v42 = vpop.f32.mrf.mxu0  ;;  %2779 = vmatmul.mubr.bf16.gmra.mxu1 %v273_v40 }
  0xf6   :  { %v2753_v43 = vpop.f32.mrf.mxu0 }
  0xf7   :  { %v275_v46 = vpack.c.bf16 %v2753_v43, %v2752_v41 }
  0xf8   :  { %v242_v44 = vpop.f32.mrf.mxu0 }
  0xf9   :  { %v274_v45 = vpack.c.bf16 %v242_v44, %v239_v42 }
  0xfa   :  { %v2756_v47 = vpop.f32.mrf.mxu0 }
  0xfb   :  { %2782 = vmatprep.mubr.bf16.mxu1 %v274_v45 }
  0xfc   :  { %v255_v48 = vpop.f32.mrf.mxu0  ;;  %2783 = vmatmul.mubr.bf16.gmra.mxu1 %v275_v46 }
  0xfe   :  { %v2757_v49 = vpop.f32.mrf.mxu0 }
  0xff   :  { %v277_v52 = vpack.c.bf16 %v2757_v49, %v2756_v47 }
 0x100   :  { %v258_v50 = vpop.f32.mrf.mxu0 }
 0x101   :  { %v276_v51 = vpack.c.bf16 %v258_v50, %v255_v48 }
 0x103   :  { %2786 = vmatprep.mubr.bf16.mxu1 %v276_v51 }
 0x104   :  { %2787 = vmatmul.mubr.bf16.gmra.mxu1 %v277_v52 }
 0x105   :  { %2838 = vmatprep.mubr.bf16.mxu1 %v3282_v4 }
 0x1ac   :  { %v2776_v56 = vpop.f32.mrf.mxu1 }
 0x1ad   :  { %v392_v62 = vadd.f32 %v2776_v56, %v2351_v58 }
 0x1ae   :  { %v383_v57 = vpop.f32.mrf.mxu1 }
 0x1af   :  { %v384_v60 = vadd.f32 %v2351_v58, %v383_v57  ;;  %v448_v6 = vmax.f32 %v392_v62, 0.0  ;;  %v3164_v57 = vld [vmem:[%s3897_s3 + $0x78] sm:$0xff]   ;;  %v3169_v62 = vld [vmem:[%s3897_s3 + $0x50] sm:$0xff]  }
 0x1b0   :  { %v2777_v59 = vpop.f32.mrf.mxu1  ;;  %2854 = vmatprep.subr.bf16.mxu0 %v3164_v57 }
 0x1b1   :  { %v395_v61 = vadd.f32 %v2777_v59, %v2351_v58  ;;  %v446_v3 = vmax.f32 %v384_v60, 0.0  ;;  %v3165_v59 = vld [vmem:[%s3897_s3 + $0x70] sm:$0xff]   ;;  %v3167_v60 = vld [vmem:[%s3897_s3 + $0x60] sm:$0xff]  }
 0x1b2   :  { %v386_v63 = vpop.f32.mrf.mxu1 }
 0x1b3   :  { %v387_v0 = vadd.f32 %v2351_v58, %v386_v63  ;;  %v449_v1 = vmax.f32 %v395_v61, 0.0  ;;  %v3168_v61 = vld [vmem:[%s3897_s3 + $0x58] sm:$0xff]  }
 0x1b4   :  { %v2780_v2 = vpop.f32.mrf.mxu1 }
 0x1b5   :  { %v447_v5 = vmax.f32 %v387_v0, 0.0  ;;  %v463_v9 = vpack.c.bf16 %v449_v1, %v448_v6  ;;  %v408_v13 = vadd.f32 %v2780_v2, %v2351_v58 }
 0x1b6   :  { %v399_v7 = vpop.f32.mrf.mxu1 }
 0x1b7   :  { %v462_v8 = vpack.c.bf16 %v447_v5, %v446_v3  ;;  %v400_v11 = vadd.f32 %v2351_v58, %v399_v7  ;;  %v452_v27 = vmax.f32 %v408_v13, 0.0 }
 0x1b8   :  { %v2781_v10 = vpop.f32.mrf.mxu1 }
 0x1b9   :  { %v411_v12 = vadd.f32 %v2781_v10, %v2351_v58  ;;  %2806 = vmatprep.mubr.bf16.mxu0 %v462_v8  ;;  %v450_v25 = vmax.f32 %v400_v11, 0.0 }
 0x1ba   :  { %v402_v16 = vpop.f32.mrf.mxu1  ;;  %2807 = vmatmul.mubr.bf16.vlgmr.msra.gmra.mxu0 %v463_v9 }
 0x1bb   :  { %v403_v22 = vadd.f32 %v2351_v58, %v402_v16  ;;  %v453_v23 = vmax.f32 %v411_v12, 0.0  ;;  %2855 = vmatpush3.bf16.msra.mxu0 %v3164_v57  ;;  %v2360_v16 = vld [vmem:[%s3900_s6] ss:$0 sm:$0xff] }
 0x1bc   :  { %v2784_v24 = vpop.f32.mrf.mxu1  ;;  %2856 = vmatprep.subr.bf16.mxu0 %v3165_v59 }
 0x1bd   :  { %v451_v26 = vmax.f32 %v403_v22, 0.0  ;;  %v465_v30 = vpack.c.bf16 %v453_v23, %v452_v27  ;;  %v424_v34 = vadd.f32 %v2784_v24, %v2351_v58 }
 0x1be   :  { %v415_v28 = vpop.f32.mrf.mxu1 }
 0x1bf   :  { %v464_v29 = vpack.c.bf16 %v451_v26, %v450_v25  ;;  %v416_v32 = vadd.f32 %v2351_v58, %v415_v28  ;;  %v456_v41 = vmax.f32 %v424_v34, 0.0  ;;  %2857 = vmatpush3.bf16.msra.mxu0 %v3165_v59 }
 0x1c0   :  { %v2785_v31 = vpop.f32.mrf.mxu1 }
 0x1c1   :  { %v427_v33 = vadd.f32 %v2785_v31, %v2351_v58  ;;  %2810 = vmatprep.mubr.bf16.mxu0 %v464_v29  ;;  %v454_v39 = vmax.f32 %v416_v32, 0.0 }
 0x1c2   :  { %v418_v35 = vpop.f32.mrf.mxu1  ;;  %2811 = vmatmul.mubr.bf16.gmra.mxu0 %v465_v30 }
 0x1c3   :  { %v419_v36 = vadd.f32 %v2351_v58, %v418_v35  ;;  %v457_v37 = vmax.f32 %v427_v33, 0.0 }
 0x1c4   :  { %v2788_v38 = vpop.f32.mrf.mxu1 }
 0x1c5   :  { %v455_v40 = vmax.f32 %v419_v36, 0.0  ;;  %v467_v44 = vpack.c.bf16 %v457_v37, %v456_v41  ;;  %v440_v48 = vadd.f32 %v2788_v38, %v2351_v58 }
 0x1c6   :  { %v431_v42 = vpop.f32.mrf.mxu1 }
 0x1c7   :  { %v466_v43 = vpack.c.bf16 %v455_v40, %v454_v39  ;;  %v432_v46 = vadd.f32 %v2351_v58, %v431_v42  ;;  %v460_v54 = vmax.f32 %v440_v48, 0.0  ;;  %v3170_v48 = vld [vmem:[%s3897_s3 + $0x48] sm:$0xff]  }
 0x1c8   :  { %v2789_v45 = vpop.f32.mrf.mxu1 }
 0x1c9   :  { %v443_v47 = vadd.f32 %v2789_v45, %v2351_v58  ;;  %2814 = vmatprep.mubr.bf16.mxu0 %v466_v43  ;;  %v458_v52 = vmax.f32 %v432_v46, 0.0 }
 0x1ca   :  { %v434_v49 = vpop.f32.mrf.mxu1  ;;  %2815 = vmatmul.mubr.bf16.gmra.mxu0 %v467_v44 }
 0x1cb   :  { %v435_v50 = vadd.f32 %v2351_v58, %v434_v49  ;;  %v461_v51 = vmax.f32 %v443_v47, 0.0  ;;  %v3166_v58 = vld [vmem:[%s3897_s3 + $0x68] sm:$0xff]  }
 0x1cc   :  { %2858 = vmatprep.subr.bf16.mxu0 %v3166_v58 }
 0x1cd   :  { %v459_v53 = vmax.f32 %v435_v50, 0.0  ;;  %v469_v56 = vpack.c.bf16 %v461_v51, %v460_v54  ;;  %2859 = vmatpush3.bf16.msra.mxu0 %v3166_v58 }
 0x1ce   :  { %2860 = vmatprep.subr.bf16.mxu0 %v3167_v60 }
 0x1cf   :  { %v468_v55 = vpack.c.bf16 %v459_v53, %v458_v52 }
 0x1d1   :  { %2818 = vmatprep.mubr.bf16.mxu0 %v468_v55  ;;  %2861 = vmatpush3.bf16.msra.mxu0 %v3167_v60 }
 0x1d2   :  { %2819 = vmatmul.mubr.bf16.gmra.mxu0 %v469_v56  ;;  %2862 = vmatprep.subr.bf16.mxu0 %v3168_v61 }
 0x1d5   :  { %2863 = vmatpush3.bf16.msra.mxu0 %v3168_v61 }
 0x1d6   :  { %2864 = vmatprep.subr.bf16.mxu0 %v3169_v62 }
 0x1d9   :  { %2865 = vmatpush3.bf16.msra.mxu0 %v3169_v62 }
 0x1da   :  { %2866 = vmatprep.subr.bf16.mxu0 %v3170_v48 }
 0x1dd   :  { %2867 = vmatpush3.bf16.msra.mxu0 %v3170_v48 }
 0x27a   :  { %v2808_v63 = vpop.f32.mrf.mxu0 }
 0x27b   :  { %v3450_v43 = vadd.f32 %v2808_v63, %v2360_v16 }
 0x27c   :  { %v575_v0 = vpop.f32.mrf.mxu0 }
 0x27d   :  { %v3456_v46 = vadd.f32 %v2360_v16, %v575_v0 }
 0x27e   :  { %v2809_v1 = vpop.f32.mrf.mxu0 }
 0x27f   :  { %v3446_v41 = vadd.f32 %v2809_v1, %v2360_v16 }
 0x280   :  { %v578_v2 = vpop.f32.mrf.mxu0 }
 0x281   :  { %v687_v44 = vpack.c.bf16 %v3446_v41, %v3450_v43  ;;  %v3454_v45 = vadd.f32 %v2360_v16, %v578_v2 }
 0x282   :  { %v2812_v3 = vpop.f32.mrf.mxu0 }
 0x283   :  { %v3438_v37 = vadd.f32 %v2812_v3, %v2360_v16  ;;  %v686_v47 = vpack.c.bf16 %v3454_v45, %v3456_v46 }
 0x284   :  { %v591_v5 = vpop.f32.mrf.mxu0 }
 0x285   :  { %v3444_v40 = vadd.f32 %v2360_v16, %v591_v5 }
 0x286   :  { %v2813_v6 = vpop.f32.mrf.mxu0 }
 0x287   :  { %v3434_v35 = vadd.f32 %v2813_v6, %v2360_v16 }
 0x288   :  { %v594_v7 = vpop.f32.mrf.mxu0 }
 0x289   :  { %v689_v38 = vpack.c.bf16 %v3434_v35, %v3438_v37  ;;  %v3442_v39 = vadd.f32 %v2360_v16, %v594_v7 }
 0x28a   :  { %v2816_v8 = vpop.f32.mrf.mxu0 }
 0x28b   :  { %v3426_v31 = vadd.f32 %v2816_v8, %v2360_v16  ;;  %v688_v42 = vpack.c.bf16 %v3442_v39, %v3444_v40 }
 0x28c   :  { %v607_v9 = vpop.f32.mrf.mxu0 }
 0x28d   :  { %v3432_v34 = vadd.f32 %v2360_v16, %v607_v9  ;;  %v3177_v9 = vld [vmem:[%s3898_s5 + $0x50] sm:$0xff]  }
 0x28e   :  { %v2817_v10 = vpop.f32.mrf.mxu0 }
 0x28f   :  { %v3422_v29 = vadd.f32 %v2817_v10, %v2360_v16  ;;  %v3178_v10 = vld [vmem:[%s3898_s5 + $0x48] sm:$0xff]  }
 0x290   :  { %v610_v11 = vpop.f32.mrf.mxu0 }
 0x291   :  { %v691_v32 = vpack.c.bf16 %v3422_v29, %v3426_v31  ;;  %v3430_v33 = vadd.f32 %v2360_v16, %v610_v11  ;;  %v3179_v11 = vld [vmem:[%s3898_s5 + $0x40] sm:$0xff]  }
 0x292   :  { %v2820_v12 = vpop.f32.mrf.mxu0 }
 0x293   :  { %v3412_v23 = vadd.f32 %v2820_v12, %v2360_v16  ;;  %v690_v36 = vpack.c.bf16 %v3430_v33, %v3432_v34 }
 0x294   :  { %v623_v13 = vpop.f32.mrf.mxu0 }
 0x295   :  { %v3416_v26 = vadd.f32 %v2360_v16, %v623_v13  ;;  %v2386_v13 = vld [vmem:[%s3899_s4 + $0x1] ss:$0 sm:$0xff] }
 0x296   :  { %v2821_v22 = vpop.f32.mrf.mxu0 }
 0x297   :  { %v3414_v24 = vadd.f32 %v2821_v22, %v2360_v16 }
 0x298   :  { %v626_v25 = vpop.f32.mrf.mxu0 }
 0x299   :  { %v693_v27 = vpack.c.bf16 %v3414_v24, %v3412_v23  ;;  %v3420_v28 = vadd.f32 %v2360_v16, %v626_v25 }
 0x29b   :  { %v692_v30 = vpack.c.bf16 %v3420_v28, %v3416_v26  ;;  %2822 = vmatprep.subr.bf16.mxu1 %v693_v27 }
 0x29c   :  { %2823 = vmatpush3.bf16.msra.mxu1 %v693_v27 }
 0x29d   :  { %2824 = vmatprep.subr.bf16.mxu1 %v692_v30 }
 0x2a0   :  { %2825 = vmatpush3.bf16.msra.mxu1 %v692_v30 }
 0x2a1   :  { %2826 = vmatprep.subr.bf16.mxu1 %v691_v32 }
 0x2a4   :  { %2827 = vmatpush3.bf16.msra.mxu1 %v691_v32 }
 0x2a5   :  { %2828 = vmatprep.subr.bf16.mxu1 %v690_v36 }
 0x2a8   :  { %2829 = vmatpush3.bf16.msra.mxu1 %v690_v36 }
 0x2a9   :  { %2830 = vmatprep.subr.bf16.mxu1 %v689_v38 }
 0x2ac   :  { %2831 = vmatpush3.bf16.msra.mxu1 %v689_v38 }
 0x2ad   :  { %2832 = vmatprep.subr.bf16.mxu1 %v688_v42 }
 0x2b0   :  { %2833 = vmatpush3.bf16.msra.mxu1 %v688_v42 }
 0x2b1   :  { %2834 = vmatprep.subr.bf16.mxu1 %v687_v44 }
 0x2b4   :  { %2835 = vmatpush3.bf16.msra.mxu1 %v687_v44 }
 0x2b5   :  { %2836 = vmatprep.subr.bf16.mxu1 %v686_v47 }
 0x2b8   :  { %2837 = vmatpush3.bf16.msra.mxu1 %v686_v47 }
 0x2bb   :  { %2839 = vmatmul.mubr.bf16.vlgmr.msra.gmra.mxu1 %v3315_v14  ;;  %v3171_v14 = vld [vmem:[%s3897_s3 + $0x40] sm:$0xff]  }
 0x2bc   :  { %2842 = vmatprep.mubr.bf16.mxu1 %v3320_v15  ;;  %2868 = vmatprep.subr.bf16.mxu0 %v3171_v14  ;;  %v3172_v15 = vld [vmem:[%s3898_s5 + $0x78] sm:$0xff]  }
 0x2bd   :  { %2869 = vmatpush3.bf16.msra.mxu0 %v3171_v14  ;;  %2886 = vmatprep.subr.bf16.mxu1 %v3172_v15 }
 0x2be   :  { %2887 = vmatpush3.bf16.msra.mxu1 %v3172_v15 }
 0x2c3   :  { %2843 = vmatmul.mubr.bf16.gmra.mxu1 %v3330_v17  ;;  %v3173_v17 = vld [vmem:[%s3898_s5 + $0x70] sm:$0xff]  }
 0x2c4   :  { %2846 = vmatprep.mubr.bf16.mxu1 %v3335_v18  ;;  %2888 = vmatprep.subr.bf16.mxu1 %v3173_v17  ;;  %v3174_v18 = vld [vmem:[%s3898_s5 + $0x68] sm:$0xff]  }
 0x2c5   :  { %2889 = vmatpush3.bf16.msra.mxu1 %v3173_v17 }
 0x2c6   :  { %2890 = vmatprep.subr.bf16.mxu1 %v3174_v18 }
 0x2c9   :  { %2891 = vmatpush3.bf16.msra.mxu1 %v3174_v18 }
 0x2cb   :  { %2847 = vmatmul.mubr.bf16.gmra.mxu1 %v3342_v19  ;;  %v3175_v19 = vld [vmem:[%s3898_s5 + $0x60] sm:$0xff]  }
 0x2cc   :  { %2850 = vmatprep.mubr.bf16.mxu1 %v3347_v20  ;;  %2892 = vmatprep.subr.bf16.mxu1 %v3175_v19  ;;  %v3176_v20 = vld [vmem:[%s3898_s5 + $0x58] sm:$0xff]  }
 0x2cd   :  { %2893 = vmatpush3.bf16.msra.mxu1 %v3175_v19 }
 0x2ce   :  { %2894 = vmatprep.subr.bf16.mxu1 %v3176_v20 }
 0x2d1   :  { %2895 = vmatpush3.bf16.msra.mxu1 %v3176_v20 }
 0x2d2   :  { %2896 = vmatprep.subr.bf16.mxu1 %v3177_v9 }
 0x2d3   :  { %2851 = vmatmul.mubr.bf16.gmra.mxu1 %v3354_v21 }
 0x2d5   :  { %2897 = vmatpush3.bf16.msra.mxu1 %v3177_v9 }
 0x2d6   :  { %2898 = vmatprep.subr.bf16.mxu1 %v3178_v10 }
 0x2d9   :  { %2899 = vmatpush3.bf16.msra.mxu1 %v3178_v10 }
 0x2da   :  { %2900 = vmatprep.subr.bf16.mxu1 %v3179_v11 }
 0x2dd   :  { %2901 = vmatpush3.bf16.msra.mxu1 %v3179_v11 }
 0x37b   :  { %v2840_v21 = vpop.f32.mrf.mxu1 }
 0x37d   :  { %v728_v49 = vpop.f32.mrf.mxu1 }
 0x37f   :  { %v2841_v50 = vpop.f32.mrf.mxu1 }
 0x380   :  { %v792_v53 = vpack.c.bf16 %v2841_v50, %v2840_v21 }
 0x381   :  { %v731_v51 = vpop.f32.mrf.mxu1 }
 0x382   :  { %v791_v52 = vpack.c.bf16 %v731_v51, %v728_v49 }
 0x383   :  { %v2844_v54 = vpop.f32.mrf.mxu1 }
 0x384   :  { %2870 = vmatprep.mubr.bf16.mxu0 %v791_v52 }
 0x385   :  { %v744_v55 = vpop.f32.mrf.mxu1  ;;  %2871 = vmatmul.mubr.bf16.vlgmr.msra.gmra.mxu0 %v792_v53 }
 0x387   :  { %v2845_v56 = vpop.f32.mrf.mxu1 }
 0x388   :  { %v794_v58 = vpack.c.bf16 %v2845_v56, %v2844_v54 }
 0x389   :  { %v747_v57 = vpop.f32.mrf.mxu1 }
 0x38a   :  { %v793_v59 = vpack.c.bf16 %v747_v57, %v744_v55 }
 0x38b   :  { %v2848_v60 = vpop.f32.mrf.mxu1 }
 0x38c   :  { %2874 = vmatprep.mubr.bf16.mxu0 %v793_v59 }
 0x38d   :  { %v760_v61 = vpop.f32.mrf.mxu1  ;;  %2875 = vmatmul.mubr.bf16.gmra.mxu0 %v794_v58 }
 0x38f   :  { %v2849_v62 = vpop.f32.mrf.mxu1 }
 0x390   :  { %v796_v1 = vpack.c.bf16 %v2849_v62, %v2848_v60 }
 0x391   :  { %v763_v63 = vpop.f32.mrf.mxu1 }
 0x392   :  { %v795_v0 = vpack.c.bf16 %v763_v63, %v760_v61 }
 0x393   :  { %v2852_v2 = vpop.f32.mrf.mxu1 }
 0x394   :  { %2878 = vmatprep.mubr.bf16.mxu0 %v795_v0 }
 0x395   :  { %v776_v3 = vpop.f32.mrf.mxu1  ;;  %2879 = vmatmul.mubr.bf16.gmra.mxu0 %v796_v1 }
 0x397   :  { %v2853_v5 = vpop.f32.mrf.mxu1 }
 0x398   :  { %v798_v8 = vpack.c.bf16 %v2853_v5, %v2852_v2 }
 0x399   :  { %v779_v6 = vpop.f32.mrf.mxu1 }
 0x39a   :  { %v797_v7 = vpack.c.bf16 %v779_v6, %v776_v3 }
 0x39c   :  { %2882 = vmatprep.mubr.bf16.mxu0 %v797_v7 }
 0x39d   :  { %2883 = vmatmul.mubr.bf16.gmra.mxu0 %v798_v8 }
 0x39e   :  { %2934 = vmatprep.mubr.bf16.mxu0 %v3282_v4 }
 0x445   :  { %v2872_v12 = vpop.f32.mrf.mxu0 }
 0x446   :  { %v915_v27 = vadd.f32 %v2872_v12, %v2386_v13 }
 0x447   :  { %v906_v4 = vpop.f32.mrf.mxu0 }
 0x448   :  { %v907_v22 = vadd.f32 %v2386_v13, %v906_v4  ;;  %v971_v47 = vmax.f32 %v915_v27, 0.0 }
 0x449   :  { %v2873_v16 = vpop.f32.mrf.mxu0 }
 0x44a   :  { %v918_v25 = vadd.f32 %v2873_v16, %v2386_v13  ;;  %v969_v42 = vmax.f32 %v907_v22, 0.0 }
 0x44b   :  { %v909_v30 = vpop.f32.mrf.mxu0 }
 0x44c   :  { %v910_v32 = vadd.f32 %v2386_v13, %v909_v30  ;;  %v972_v36 = vmax.f32 %v918_v25, 0.0 }
 0x44d   :  { %v2876_v38 = vpop.f32.mrf.mxu0 }
 0x44e   :  { %v970_v44 = vmax.f32 %v910_v32, 0.0  ;;  %v986_v15 = vpack.c.bf16 %v972_v36, %v971_v47  ;;  %v931_v20 = vadd.f32 %v2876_v38, %v2386_v13  ;;  %v3180_v38 = vld [vmem:[%s3897_s3 + $0xb8] sm:$0xff]  }
 0x44f   :  { %v922_v48 = vpop.f32.mrf.mxu0  ;;  %2950 = vmatprep.subr.bf16.mxu1 %v3180_v38  ;;  %v3184_v47 = vld [vmem:[%s3897_s3 + $0x98] sm:$0xff]  }
 0x450   :  { %v985_v14 = vpack.c.bf16 %v970_v44, %v969_v42  ;;  %v923_v18 = vadd.f32 %v2386_v13, %v922_v48  ;;  %v975_v54 = vmax.f32 %v931_v20, 0.0  ;;  %v3181_v42 = vld [vmem:[%s3897_s3 + $0xb0] sm:$0xff]   ;;  %v3183_v44 = vld [vmem:[%s3897_s3 + $0xa0] sm:$0xff]  }
 0x451   :  { %v2877_v17 = vpop.f32.mrf.mxu0  ;;  %v3185_v48 = vld [vmem:[%s3897_s3 + $0x90] sm:$0xff]  }
 0x452   :  { %v934_v19 = vadd.f32 %v2877_v17, %v2386_v13  ;;  %2902 = vmatprep.mubr.bf16.mxu1 %v985_v14  ;;  %v973_v52 = vmax.f32 %v923_v18, 0.0  ;;  %v2412_v14 = vld [vmem:[%s3900_s6 + $0x1] ss:$0 sm:$0xff] }
 0x453   :  { %v925_v21 = vpop.f32.mrf.mxu0  ;;  %2903 = vmatmul.mubr.bf16.vlgmr.msra.gmra.mxu1 %v986_v15 }
 0x454   :  { %v926_v49 = vadd.f32 %v2386_v13, %v925_v21  ;;  %v976_v50 = vmax.f32 %v934_v19, 0.0  ;;  %2951 = vmatpush3.bf16.msra.mxu1 %v3180_v38  ;;  %v3587_v38 = vld [vmem:[%s3896_s1 + $0x10] sm:$0xff]  }
 0x455   :  { %v2880_v51 = vpop.f32.mrf.mxu0  ;;  %2952 = vmatprep.subr.bf16.mxu1 %v3181_v42 }
 0x456   :  { %v974_v53 = vmax.f32 %v926_v49, 0.0  ;;  %v988_v57 = vpack.c.bf16 %v976_v50, %v975_v54  ;;  %v947_v61 = vadd.f32 %v2880_v51, %v2386_v13 }
 0x457   :  { %v938_v55 = vpop.f32.mrf.mxu0 }
 0x458   :  { %v987_v56 = vpack.c.bf16 %v974_v53, %v973_v52  ;;  %v939_v58 = vadd.f32 %v2386_v13, %v938_v55  ;;  %v979_v5 = vmax.f32 %v947_v61, 0.0  ;;  %2953 = vmatpush3.bf16.msra.mxu1 %v3181_v42  ;;  %v3593_v42 = vld [vmem:[%s3896_s1 + $0x18] sm:$0xff]  }
 0x459   :  { %v2881_v59 = vpop.f32.mrf.mxu0 }
 0x45a   :  { %v950_v60 = vadd.f32 %v2881_v59, %v2386_v13  ;;  %2906 = vmatprep.mubr.bf16.mxu1 %v987_v56  ;;  %v977_v2 = vmax.f32 %v939_v58, 0.0 }
 0x45b   :  { %v941_v62 = vpop.f32.mrf.mxu0  ;;  %2907 = vmatmul.mubr.bf16.gmra.mxu1 %v988_v57 }
 0x45c   :  { %v942_v63 = vadd.f32 %v2386_v13, %v941_v62  ;;  %v980_v0 = vmax.f32 %v950_v60, 0.0 }
 0x45d   :  { %v2884_v1 = vpop.f32.mrf.mxu0 }
 0x45e   :  { %v978_v3 = vmax.f32 %v942_v63, 0.0  ;;  %v990_v8 = vpack.c.bf16 %v980_v0, %v979_v5  ;;  %v963_v12 = vadd.f32 %v2884_v1, %v2386_v13 }
 0x45f   :  { %v954_v6 = vpop.f32.mrf.mxu0 }
 0x460   :  { %v989_v7 = vpack.c.bf16 %v978_v3, %v977_v2  ;;  %v955_v10 = vadd.f32 %v2386_v13, %v954_v6  ;;  %v983_v30 = vmax.f32 %v963_v12, 0.0 }
 0x461   :  { %v2885_v9 = vpop.f32.mrf.mxu0 }
 0x462   :  { %v966_v11 = vadd.f32 %v2885_v9, %v2386_v13  ;;  %2910 = vmatprep.mubr.bf16.mxu1 %v989_v7  ;;  %v981_v25 = vmax.f32 %v955_v10, 0.0 }
 0x463   :  { %v957_v4 = vpop.f32.mrf.mxu0  ;;  %2911 = vmatmul.mubr.bf16.gmra.mxu1 %v990_v8 }
 0x464   :  { %v958_v16 = vadd.f32 %v2386_v13, %v957_v4  ;;  %v984_v22 = vmax.f32 %v966_v11, 0.0  ;;  %v3182_v13 = vld [vmem:[%s3897_s3 + $0xa8] sm:$0xff]  }
 0x465   :  { %2954 = vmatprep.subr.bf16.mxu1 %v3182_v13 }
 0x466   :  { %v982_v27 = vmax.f32 %v958_v16, 0.0  ;;  %v992_v36 = vpack.c.bf16 %v984_v22, %v983_v30  ;;  %2955 = vmatpush3.bf16.msra.mxu1 %v3182_v13  ;;  %v3599_v13 = vld [vmem:[%s3896_s1 + $0x20] sm:$0xff]  }
 0x467   :  { %2956 = vmatprep.subr.bf16.mxu1 %v3183_v44 }
 0x468   :  { %v991_v32 = vpack.c.bf16 %v982_v27, %v981_v25 }
 0x46a   :  { %2914 = vmatprep.mubr.bf16.mxu1 %v991_v32  ;;  %2957 = vmatpush3.bf16.msra.mxu1 %v3183_v44  ;;  %v3605_v44 = vld [vmem:[%s3896_s1 + $0x28] sm:$0xff]  }
 0x46b   :  { %2915 = vmatmul.mubr.bf16.gmra.mxu1 %v992_v36  ;;  %2958 = vmatprep.subr.bf16.mxu1 %v3184_v47  ;;  %v3581_v36 = vld [vmem:[%s3896_s1 + $0x8] sm:$0xff]  }
 0x46e   :  { %2959 = vmatpush3.bf16.msra.mxu1 %v3184_v47  ;;  %v3611_v47 = vld [vmem:[%s3896_s1 + $0x30] sm:$0xff]  }
 0x46f   :  { %2960 = vmatprep.subr.bf16.mxu1 %v3185_v48 }
 0x472   :  { %2961 = vmatpush3.bf16.msra.mxu1 %v3185_v48  ;;  %v3617_v48 = vld [vmem:[%s3896_s1 + $0x38] sm:$0xff]  }
 0x513   :  { %v2904_v15 = vpop.f32.mrf.mxu1 }
 0x514   :  { %v3522_v17 = vadd.f32 %v2904_v15, %v2412_v14  ;;  %v3187_v15 = vld [vmem:[%s3897_s3 + $0x80] sm:$0xff]  }
 0x515   :  { %v1100_v18 = vpop.f32.mrf.mxu1 }
 0x516   :  { %v3526_v19 = vadd.f32 %v3522_v17, %v3450_v43  ;;  %v3528_v20 = vadd.f32 %v2412_v14, %v1100_v18  ;;  %v3189_v18 = vld [vmem:[%s3898_s5 + $0xb0] sm:$0xff]  }
 0x517   :  { %v2905_v21 = vpop.f32.mrf.mxu1 }
 0x518   :  { %v3532_v49 = vadd.f32 %v3528_v20, %v3456_v46  ;;  %v1112_v50 = vadd.f32 %v2905_v21, %v2412_v14  ;;  %v3191_v21 = vld [vmem:[%s3898_s5 + $0xa0] sm:$0xff]  }
 0x519   :  { %v1103_v51 = vpop.f32.mrf.mxu1 }
 0x51a   :  { %v3535_v52 = vadd.f32 %v1112_v50, %v3446_v41  ;;  %v1104_v53 = vadd.f32 %v2412_v14, %v1103_v51  ;;  %v1212_v32 = vpack.c.bf16 %v1112_v50, %v3522_v17  ;;  %v3188_v17 = vld [vmem:[%s3898_s5 + $0xb8] sm:$0xff]  }
 0x51b   :  { %v2908_v54 = vpop.f32.mrf.mxu1  ;;  %v3192_v50 = vld [vmem:[%s3898_s5 + $0x98] sm:$0xff]  }
 0x51c   :  { %v3538_v55 = vadd.f32 %v1104_v53, %v3454_v45  ;;  %v1125_v56 = vadd.f32 %v2908_v54, %v2412_v14 }
 0x51d   :  { %v1116_v43 = vpop.f32.mrf.mxu1 }
 0x51e   :  { %v3541_v57 = vadd.f32 %v1125_v56, %v3438_v37  ;;  %v1117_v59 = vadd.f32 %v2412_v14, %v1116_v43 }
 0x51f   :  { %v2909_v58 = vpop.f32.mrf.mxu1 }
 0x520   :  { %v3544_v46 = vadd.f32 %v1117_v59, %v3444_v40  ;;  %v1128_v60 = vadd.f32 %v2909_v58, %v2412_v14 }
 0x521   :  { %v1119_v61 = vpop.f32.mrf.mxu1 }
 0x522   :  { %v3547_v41 = vadd.f32 %v1128_v60, %v3434_v35  ;;  %v1120_v62 = vadd.f32 %v2412_v14, %v1119_v61 }
 0x523   :  { %v2912_v63 = vpop.f32.mrf.mxu1 }
 0x524   :  { %v3550_v45 = vadd.f32 %v1120_v62, %v3442_v39  ;;  %v1141_v0 = vadd.f32 %v2912_v63, %v2412_v14 }
 0x525   :  { %v1132_v1 = vpop.f32.mrf.mxu1 }
 0x526   :  { %v3553_v37 = vadd.f32 %v1141_v0, %v3426_v31  ;;  %v1133_v2 = vadd.f32 %v2412_v14, %v1132_v1 }
 0x527   :  { %v2913_v3 = vpop.f32.mrf.mxu1 }
 0x528   :  { %v3556_v40 = vadd.f32 %v1133_v2, %v3432_v34  ;;  %v1144_v5 = vadd.f32 %v2913_v3, %v2412_v14 }
 0x529   :  { %v1135_v6 = vpop.f32.mrf.mxu1 }
 0x52a   :  { %v3559_v35 = vadd.f32 %v1144_v5, %v3422_v29  ;;  %v1136_v7 = vadd.f32 %v2412_v14, %v1135_v6 }
 0x52b   :  { %v2916_v8 = vpop.f32.mrf.mxu1 }
 0x52c   :  { %v3562_v39 = vadd.f32 %v1136_v7, %v3430_v33  ;;  %v1157_v9 = vadd.f32 %v2916_v8, %v2412_v14  ;;  %v1215_v30 = vpack.c.bf16 %v1136_v7, %v1133_v2 }
 0x52d   :  { %v1148_v10 = vpop.f32.mrf.mxu1 }
 0x52e   :  { %v3565_v31 = vadd.f32 %v1157_v9, %v3412_v23  ;;  %v1149_v11 = vadd.f32 %v2412_v14, %v1148_v10  ;;  %v1216_v23 = vpack.c.bf16 %v1144_v5, %v1141_v0 }
 0x52f   :  { %v2917_v12 = vpop.f32.mrf.mxu1 }
 0x530   :  { %v3568_v34 = vadd.f32 %v1149_v11, %v3416_v26  ;;  %v1160_v4 = vadd.f32 %v2917_v12, %v2412_v14  ;;  %v1214_v26 = vpack.c.bf16 %v1128_v60, %v1125_v56 }
 0x531   :  { %v1151_v16 = vpop.f32.mrf.mxu1 }
 0x532   :  { %v3571_v29 = vadd.f32 %v1160_v4, %v3414_v24  ;;  %v1218_v22 = vpack.c.bf16 %v1160_v4, %v1157_v9  ;;  %v1152_v25 = vadd.f32 %v2412_v14, %v1151_v16  ;;  %v1213_v24 = vpack.c.bf16 %v1120_v62, %v1117_v59  ;;  %v3186_v14 = vld [vmem:[%s3897_s3 + $0x88] sm:$0xff]   ;;  %v3219_v16 = vld [vmem:[%s3896_s1] sm:$0xff]  }
 0x533   :  { %2962 = vmatprep.subr.bf16.mxu1 %v3186_v14 }
 0x534   :  { %v3574_v33 = vadd.f32 %v1152_v25, %v3420_v28  ;;  %v1217_v27 = vpack.c.bf16 %v1152_v25, %v1149_v11  ;;  %2918 = vmatprep.subr.bf16.mxu0 %v1218_v22  ;;  %v1211_v28 = vpack.c.bf16 %v1104_v53, %v3528_v20  ;;  %2963 = vmatpush3.bf16.msra.mxu1 %v3186_v14  ;;  %v3190_v20 = vld [vmem:[%s3898_s5 + $0xa8] sm:$0xff]  }
 0x535   :  { %2919 = vmatpush3.bf16.msra.mxu0 %v1218_v22  ;;  %2964 = vmatprep.subr.bf16.mxu1 %v3187_v15  ;;  %v3193_v22 = vld [vmem:[%s3898_s5 + $0x90] sm:$0xff]   ;;  %v3194_v25 = vld [vmem:[%s3898_s5 + $0x88] sm:$0xff]  }
 0x536   :  { %2920 = vmatprep.subr.bf16.mxu0 %v1217_v27 }
 0x538   :  { %2965 = vmatpush3.bf16.msra.mxu1 %v3187_v15 }
 0x539   :  { %2921 = vmatpush3.bf16.msra.mxu0 %v1217_v27  ;;  %v3195_v27 = vld [vmem:[%s3898_s5 + $0x80] sm:$0xff]  }
 0x53a   :  { %2922 = vmatprep.subr.bf16.mxu0 %v1216_v23 }
 0x53d   :  { %2923 = vmatpush3.bf16.msra.mxu0 %v1216_v23 }
 0x53e   :  { %2924 = vmatprep.subr.bf16.mxu0 %v1215_v30 }
 0x541   :  { %2925 = vmatpush3.bf16.msra.mxu0 %v1215_v30 }
 0x542   :  { %2926 = vmatprep.subr.bf16.mxu0 %v1214_v26 }
 0x545   :  { %2927 = vmatpush3.bf16.msra.mxu0 %v1214_v26  ;;  %v2438_v26 = vld [vmem:[%s3899_s4 + $0x2] ss:$0 sm:$0xff] }
 0x546   :  { %2928 = vmatprep.subr.bf16.mxu0 %v1213_v24 }
 0x549   :  { %2929 = vmatpush3.bf16.msra.mxu0 %v1213_v24 }
 0x54a   :  { %2930 = vmatprep.subr.bf16.mxu0 %v1212_v32 }
 0x54d   :  { %2931 = vmatpush3.bf16.msra.mxu0 %v1212_v32 }
 0x54e   :  { %2932 = vmatprep.subr.bf16.mxu0 %v1211_v28 }
 0x551   :  { %2933 = vmatpush3.bf16.msra.mxu0 %v1211_v28 }
 0x552   :  { %2982 = vmatprep.subr.bf16.mxu0 %v3188_v17 }
 0x554   :  { %2935 = vmatmul.mubr.bf16.vlgmr.msra.gmra.mxu0 %v3581_v36 }
 0x555   :  { %2938 = vmatprep.mubr.bf16.mxu0 %v3587_v38  ;;  %2983 = vmatpush3.bf16.msra.mxu0 %v3188_v17 }
 0x556   :  { %2984 = vmatprep.subr.bf16.mxu0 %v3189_v18 }
 0x559   :  { %2985 = vmatpush3.bf16.msra.mxu0 %v3189_v18 }
 0x55a   :  { %2986 = vmatprep.subr.bf16.mxu0 %v3190_v20 }
 0x55c   :  { %2939 = vmatmul.mubr.bf16.gmra.mxu0 %v3593_v42 }
 0x55d   :  { %2942 = vmatprep.mubr.bf16.mxu0 %v3599_v13  ;;  %2987 = vmatpush3.bf16.msra.mxu0 %v3190_v20 }
 0x55e   :  { %2988 = vmatprep.subr.bf16.mxu0 %v3191_v21 }
 0x561   :  { %2989 = vmatpush3.bf16.msra.mxu0 %v3191_v21 }
 0x562   :  { %2990 = vmatprep.subr.bf16.mxu0 %v3192_v50 }
 0x564   :  { %2943 = vmatmul.mubr.bf16.gmra.mxu0 %v3605_v44 }
 0x565   :  { %2946 = vmatprep.mubr.bf16.mxu0 %v3611_v47  ;;  %2991 = vmatpush3.bf16.msra.mxu0 %v3192_v50 }
 0x566   :  { %2992 = vmatprep.subr.bf16.mxu0 %v3193_v22 }
 0x569   :  { %2993 = vmatpush3.bf16.msra.mxu0 %v3193_v22 }
 0x56a   :  { %2994 = vmatprep.subr.bf16.mxu0 %v3194_v25 }
 0x56c   :  { %2947 = vmatmul.mubr.bf16.gmra.mxu0 %v3617_v48 }
 0x56d   :  { %2995 = vmatpush3.bf16.msra.mxu0 %v3194_v25 }
 0x56e   :  { %2996 = vmatprep.subr.bf16.mxu0 %v3195_v27 }
 0x571   :  { %2997 = vmatpush3.bf16.msra.mxu0 %v3195_v27 }
 0x614   :  { %v2936_v51 = vpop.f32.mrf.mxu0 }
 0x616   :  { %v1253_v53 = vpop.f32.mrf.mxu0 }
 0x618   :  { %v2937_v54 = vpop.f32.mrf.mxu0 }
 0x619   :  { %v1317_v59 = vpack.c.bf16 %v2937_v54, %v2936_v51 }
 0x61a   :  { %v1256_v56 = vpop.f32.mrf.mxu0 }
 0x61b   :  { %v1316_v43 = vpack.c.bf16 %v1256_v56, %v1253_v53 }
 0x61c   :  { %v2940_v58 = vpop.f32.mrf.mxu0 }
 0x61d   :  { %2966 = vmatprep.mubr.bf16.mxu1 %v1316_v43 }
 0x61e   :  { %v1269_v60 = vpop.f32.mrf.mxu0  ;;  %2967 = vmatmul.mubr.bf16.vlgmr.msra.gmra.mxu1 %v1317_v59 }
 0x620   :  { %v2941_v61 = vpop.f32.mrf.mxu0 }
 0x621   :  { %v1319_v0 = vpack.c.bf16 %v2941_v61, %v2940_v58 }
 0x622   :  { %v1272_v62 = vpop.f32.mrf.mxu0 }
 0x623   :  { %v1318_v63 = vpack.c.bf16 %v1272_v62, %v1269_v60 }
 0x624   :  { %v2944_v1 = vpop.f32.mrf.mxu0 }
 0x625   :  { %2970 = vmatprep.mubr.bf16.mxu1 %v1318_v63 }
 0x626   :  { %v1285_v2 = vpop.f32.mrf.mxu0  ;;  %2971 = vmatmul.mubr.bf16.gmra.mxu1 %v1319_v0 }
 0x628   :  { %v2945_v3 = vpop.f32.mrf.mxu0 }
 0x629   :  { %v1321_v7 = vpack.c.bf16 %v2945_v3, %v2944_v1 }
 0x62a   :  { %v1288_v5 = vpop.f32.mrf.mxu0 }
 0x62b   :  { %v1320_v6 = vpack.c.bf16 %v1288_v5, %v1285_v2 }
 0x62c   :  { %v2948_v8 = vpop.f32.mrf.mxu0 }
 0x62d   :  { %2974 = vmatprep.mubr.bf16.mxu1 %v1320_v6 }
 0x62e   :  { %v1301_v9 = vpop.f32.mrf.mxu0  ;;  %2975 = vmatmul.mubr.bf16.gmra.mxu1 %v1321_v7 }
 0x630   :  { %v2949_v10 = vpop.f32.mrf.mxu0 }
 0x631   :  { %v1323_v4 = vpack.c.bf16 %v2949_v10, %v2948_v8 }
 0x632   :  { %v1304_v11 = vpop.f32.mrf.mxu0 }
 0x633   :  { %v1322_v12 = vpack.c.bf16 %v1304_v11, %v1301_v9 }
 0x635   :  { %2978 = vmatprep.mubr.bf16.mxu1 %v1322_v12 }
 0x636   :  { %2979 = vmatmul.mubr.bf16.gmra.mxu1 %v1323_v4 }
 0x637   :  { %3030 = vmatprep.mubr.bf16.mxu1 %v3219_v16 }
 0x6de   :  { %v2968_v23 = vpop.f32.mrf.mxu1 }
 0x6df   :  { %v1440_v14 = vadd.f32 %v2968_v23, %v2438_v26 }
 0x6e0   :  { %v1431_v30 = vpop.f32.mrf.mxu1 }
 0x6e1   :  { %v1432_v32 = vadd.f32 %v2438_v26, %v1431_v30  ;;  %v1496_v51 = vmax.f32 %v1440_v14, 0.0 }
 0x6e2   :  { %v2969_v24 = vpop.f32.mrf.mxu1 }
 0x6e3   :  { %v1443_v28 = vadd.f32 %v2969_v24, %v2438_v26  ;;  %v1494_v21 = vmax.f32 %v1432_v32, 0.0 }
 0x6e4   :  { %v1434_v15 = vpop.f32.mrf.mxu1 }
 0x6e5   :  { %v1435_v17 = vadd.f32 %v2438_v26, %v1434_v15  ;;  %v1497_v18 = vmax.f32 %v1443_v28, 0.0 }
 0x6e6   :  { %v2972_v20 = vpop.f32.mrf.mxu1 }
 0x6e7   :  { %v1495_v50 = vmax.f32 %v1435_v17, 0.0  ;;  %v1511_v56 = vpack.c.bf16 %v1497_v18, %v1496_v51  ;;  %v1456_v60 = vadd.f32 %v2972_v20, %v2438_v26 }
 0x6e8   :  { %v1447_v53 = vpop.f32.mrf.mxu1 }
 0x6e9   :  { %v1510_v54 = vpack.c.bf16 %v1495_v50, %v1494_v21  ;;  %v1448_v59 = vadd.f32 %v2438_v26, %v1447_v53  ;;  %v1500_v3 = vmax.f32 %v1456_v60, 0.0  ;;  %v3200_v60 = vld [vmem:[%s3897_s3 + $0xd8] sm:$0xff]  }
 0x6ea   :  { %v2973_v43 = vpop.f32.mrf.mxu1 }
 0x6eb   :  { %v1459_v58 = vadd.f32 %v2973_v43, %v2438_v26  ;;  %2998 = vmatprep.mubr.bf16.mxu0 %v1510_v54  ;;  %v1498_v1 = vmax.f32 %v1448_v59, 0.0  ;;  %v3196_v43 = vld [vmem:[%s3897_s3 + $0xf8] sm:$0xff]   ;;  %v3197_v59 = vld [vmem:[%s3897_s3 + $0xf0] sm:$0xff]  }
 0x6ec   :  { %v1450_v61 = vpop.f32.mrf.mxu1  ;;  %2999 = vmatmul.mubr.bf16.vlgmr.msra.gmra.mxu0 %v1511_v56  ;;  %3046 = vmatprep.subr.bf16.mxu0 %v3196_v43 }
 0x6ed   :  { %v1451_v62 = vadd.f32 %v2438_v26, %v1450_v61  ;;  %v1501_v63 = vmax.f32 %v1459_v58, 0.0  ;;  %3047 = vmatpush3.bf16.msra.mxu0 %v3196_v43  ;;  %v3199_v58 = vld [vmem:[%s3897_s3 + $0xe0] sm:$0xff]   ;;  %v3201_v61 = vld [vmem:[%s3897_s3 + $0xd0] sm:$0xff]  }
 0x6ee   :  { %v2976_v0 = vpop.f32.mrf.mxu1  ;;  %3048 = vmatprep.subr.bf16.mxu0 %v3197_v59 }
 0x6ef   :  { %v1499_v2 = vmax.f32 %v1451_v62, 0.0  ;;  %v1513_v7 = vpack.c.bf16 %v1501_v63, %v1500_v3  ;;  %v1472_v11 = vadd.f32 %v2976_v0, %v2438_v26  ;;  %v2464_v62 = vld [vmem:[%s3900_s6 + $0x2] ss:$0 sm:$0xff] }
 0x6f0   :  { %v1463_v5 = vpop.f32.mrf.mxu1 }
 0x6f1   :  { %v1512_v6 = vpack.c.bf16 %v1499_v2, %v1498_v1  ;;  %v1464_v9 = vadd.f32 %v2438_v26, %v1463_v5  ;;  %v1504_v23 = vmax.f32 %v1472_v11, 0.0  ;;  %3049 = vmatpush3.bf16.msra.mxu0 %v3197_v59 }
 0x6f2   :  { %v2977_v8 = vpop.f32.mrf.mxu1 }
 0x6f3   :  { %v1475_v10 = vadd.f32 %v2977_v8, %v2438_v26  ;;  %3002 = vmatprep.mubr.bf16.mxu0 %v1512_v6  ;;  %v1502_v25 = vmax.f32 %v1464_v9, 0.0 }
 0x6f4   :  { %v1466_v12 = vpop.f32.mrf.mxu1  ;;  %3003 = vmatmul.mubr.bf16.gmra.mxu0 %v1513_v7 }
 0x6f5   :  { %v1467_v4 = vadd.f32 %v2438_v26, %v1466_v12  ;;  %v1505_v16 = vmax.f32 %v1475_v10, 0.0 }
 0x6f6   :  { %v2980_v22 = vpop.f32.mrf.mxu1 }
 0x6f7   :  { %v1503_v27 = vmax.f32 %v1467_v4, 0.0  ;;  %v1515_v32 = vpack.c.bf16 %v1505_v16, %v1504_v23  ;;  %v1488_v17 = vadd.f32 %v2980_v22, %v2438_v26 }
 0x6f8   :  { %v1479_v30 = vpop.f32.mrf.mxu1 }
 0x6f9   :  { %v1514_v24 = vpack.c.bf16 %v1503_v27, %v1502_v25  ;;  %v1480_v14 = vadd.f32 %v2438_v26, %v1479_v30  ;;  %v1508_v53 = vmax.f32 %v1488_v17, 0.0 }
 0x6fa   :  { %v2981_v28 = vpop.f32.mrf.mxu1 }
 0x6fb   :  { %v1491_v15 = vadd.f32 %v2981_v28, %v2438_v26  ;;  %3006 = vmatprep.mubr.bf16.mxu0 %v1514_v24  ;;  %v1506_v50 = vmax.f32 %v1480_v14, 0.0 }
 0x6fc   :  { %v1482_v18 = vpop.f32.mrf.mxu1  ;;  %3007 = vmatmul.mubr.bf16.gmra.mxu0 %v1515_v32 }
 0x6fd   :  { %v1483_v20 = vadd.f32 %v2438_v26, %v1482_v18  ;;  %v1509_v21 = vmax.f32 %v1491_v15, 0.0  ;;  %v3198_v26 = vld [vmem:[%s3897_s3 + $0xe8] sm:$0xff]  }
 0x6fe   :  { %3050 = vmatprep.subr.bf16.mxu0 %v3198_v26 }
 0x6ff   :  { %v1507_v51 = vmax.f32 %v1483_v20, 0.0  ;;  %v1517_v56 = vpack.c.bf16 %v1509_v21, %v1508_v53  ;;  %3051 = vmatpush3.bf16.msra.mxu0 %v3198_v26 }
 0x700   :  { %3052 = vmatprep.subr.bf16.mxu0 %v3199_v58 }
 0x701   :  { %v1516_v54 = vpack.c.bf16 %v1507_v51, %v1506_v50 }
 0x703   :  { %3010 = vmatprep.mubr.bf16.mxu0 %v1516_v54  ;;  %3053 = vmatpush3.bf16.msra.mxu0 %v3199_v58 }
 0x704   :  { %3011 = vmatmul.mubr.bf16.gmra.mxu0 %v1517_v56  ;;  %3054 = vmatprep.subr.bf16.mxu0 %v3200_v60 }
 0x707   :  { %3055 = vmatpush3.bf16.msra.mxu0 %v3200_v60 }
 0x708   :  { %3056 = vmatprep.subr.bf16.mxu0 %v3201_v61 }
 0x70b   :  { %3057 = vmatpush3.bf16.msra.mxu0 %v3201_v61 }
 0x7ac   :  { %v3000_v63 = vpop.f32.mrf.mxu0 }
 0x7ad   :  { %v3677_v0 = vadd.f32 %v3000_v63, %v2464_v62 }
 0x7ae   :  { %v1625_v1 = vpop.f32.mrf.mxu0 }
 0x7af   :  { %v3681_v2 = vadd.f32 %v3677_v0, %v3526_v19  ;;  %v3683_v3 = vadd.f32 %v2464_v62, %v1625_v1 }
 0x7b0   :  { %v3001_v5 = vpop.f32.mrf.mxu0 }
 0x7b1   :  { %v3687_v6 = vadd.f32 %v3683_v3, %v3532_v49  ;;  %v1637_v7 = vadd.f32 %v3001_v5, %v2464_v62 }
 0x7b2   :  { %v1628_v8 = vpop.f32.mrf.mxu0 }
 0x7b3   :  { %v3690_v9 = vadd.f32 %v1637_v7, %v3535_v52  ;;  %v1629_v10 = vadd.f32 %v2464_v62, %v1628_v8  ;;  %v1737_v61 = vpack.c.bf16 %v1637_v7, %v3677_v0 }
 0x7b4   :  { %v3004_v11 = vpop.f32.mrf.mxu0 }
 0x7b5   :  { %v3693_v12 = vadd.f32 %v1629_v10, %v3538_v55  ;;  %v1650_v4 = vadd.f32 %v3004_v11, %v2464_v62 }
 0x7b6   :  { %v1641_v19 = vpop.f32.mrf.mxu0 }
 0x7b7   :  { %v3696_v16 = vadd.f32 %v1650_v4, %v3541_v57  ;;  %v1642_v22 = vadd.f32 %v2464_v62, %v1641_v19 }
 0x7b8   :  { %v3005_v25 = vpop.f32.mrf.mxu0 }
 0x7b9   :  { %v3699_v49 = vadd.f32 %v1642_v22, %v3544_v46  ;;  %v1653_v27 = vadd.f32 %v3005_v25, %v2464_v62 }
 0x7ba   :  { %v1644_v23 = vpop.f32.mrf.mxu0 }
 0x7bb   :  { %v3702_v52 = vadd.f32 %v1653_v27, %v3547_v41  ;;  %v1645_v30 = vadd.f32 %v2464_v62, %v1644_v23 }
 0x7bc   :  { %v3008_v24 = vpop.f32.mrf.mxu0 }
 0x7bd   :  { %v3705_v55 = vadd.f32 %v1645_v30, %v3550_v45  ;;  %v1666_v32 = vadd.f32 %v3008_v24, %v2464_v62 }
 0x7be   :  { %v1657_v28 = vpop.f32.mrf.mxu0 }
 0x7bf   :  { %v3708_v57 = vadd.f32 %v1666_v32, %v3553_v37  ;;  %v1658_v14 = vadd.f32 %v2464_v62, %v1657_v28 }
 0x7c0   :  { %v3009_v15 = vpop.f32.mrf.mxu0 }
 0x7c1   :  { %v3711_v46 = vadd.f32 %v1658_v14, %v3556_v40  ;;  %v1669_v17 = vadd.f32 %v3009_v15, %v2464_v62 }
 0x7c2   :  { %v1660_v18 = vpop.f32.mrf.mxu0 }
 0x7c3   :  { %v3714_v41 = vadd.f32 %v1669_v17, %v3559_v35  ;;  %v1661_v20 = vadd.f32 %v2464_v62, %v1660_v18 }
 0x7c4   :  { %v3012_v21 = vpop.f32.mrf.mxu0 }
 0x7c5   :  { %v3717_v45 = vadd.f32 %v1661_v20, %v3562_v39  ;;  %v1682_v50 = vadd.f32 %v3012_v21, %v2464_v62  ;;  %v1740_v60 = vpack.c.bf16 %v1661_v20, %v1658_v14  ;;  %v3209_v21 = vld [vmem:[%s3898_s5 + $0xd0] sm:$0xff]  }
 0x7c6   :  { %v1673_v51 = vpop.f32.mrf.mxu0 }
 0x7c7   :  { %v3720_v37 = vadd.f32 %v1682_v50, %v3565_v31  ;;  %v1674_v53 = vadd.f32 %v2464_v62, %v1673_v51  ;;  %v1741_v31 = vpack.c.bf16 %v1669_v17, %v1666_v32  ;;  %v3211_v51 = vld [vmem:[%s3898_s5 + $0xc0] sm:$0xff]  }
 0x7c8   :  { %v3013_v54 = vpop.f32.mrf.mxu0 }
 0x7c9   :  { %v3723_v40 = vadd.f32 %v1674_v53, %v3568_v34  ;;  %v1685_v56 = vadd.f32 %v3013_v54, %v2464_v62  ;;  %v1739_v34 = vpack.c.bf16 %v1653_v27, %v1650_v4 }
 0x7ca   :  { %v1676_v43 = vpop.f32.mrf.mxu0 }
 0x7cb   :  { %v3726_v35 = vadd.f32 %v1685_v56, %v3571_v29  ;;  %v1743_v59 = vpack.c.bf16 %v1685_v56, %v1682_v50  ;;  %v1677_v26 = vadd.f32 %v2464_v62, %v1676_v43  ;;  %v1738_v29 = vpack.c.bf16 %v1645_v30, %v1642_v22  ;;  %v3202_v62 = vld [vmem:[%s3897_s3 + $0xc8] sm:$0xff]   ;;  %v2490_v56 = vld [vmem:[%s3899_s4 + $0x3] ss:$0 sm:$0xff] }
 0x7cc   :  { %3058 = vmatprep.subr.bf16.mxu0 %v3202_v62  ;;  %v3210_v50 = vld [vmem:[%s3898_s5 + $0xc8] sm:$0xff]  }
 0x7cd   :  { %v3729_v39 = vadd.f32 %v1677_v26, %v3574_v33  ;;  %v1742_v58 = vpack.c.bf16 %v1677_v26, %v1674_v53  ;;  %3014 = vmatprep.subr.bf16.mxu1 %v1743_v59  ;;  %v1736_v33 = vpack.c.bf16 %v1629_v10, %v3683_v3  ;;  %3059 = vmatpush3.bf16.msra.mxu0 %v3202_v62 }
 0x7ce   :  { %3015 = vmatpush3.bf16.msra.mxu1 %v1743_v59 }
 0x7cf   :  { %3016 = vmatprep.subr.bf16.mxu1 %v1742_v58 }
 0x7d2   :  { %3017 = vmatpush3.bf16.msra.mxu1 %v1742_v58 }
 0x7d3   :  { %3018 = vmatprep.subr.bf16.mxu1 %v1741_v31 }
 0x7d6   :  { %3019 = vmatpush3.bf16.msra.mxu1 %v1741_v31 }
 0x7d7   :  { %3020 = vmatprep.subr.bf16.mxu1 %v1740_v60 }
 0x7da   :  { %3021 = vmatpush3.bf16.msra.mxu1 %v1740_v60 }
 0x7db   :  { %3022 = vmatprep.subr.bf16.mxu1 %v1739_v34 }
 0x7de   :  { %3023 = vmatpush3.bf16.msra.mxu1 %v1739_v34 }
 0x7df   :  { %3024 = vmatprep.subr.bf16.mxu1 %v1738_v29 }
 0x7e2   :  { %3025 = vmatpush3.bf16.msra.mxu1 %v1738_v29 }
 0x7e3   :  { %3026 = vmatprep.subr.bf16.mxu1 %v1737_v61 }
 0x7e6   :  { %3027 = vmatpush3.bf16.msra.mxu1 %v1737_v61 }
 0x7e7   :  { %3028 = vmatprep.subr.bf16.mxu1 %v1736_v33 }
 0x7ea   :  { %3029 = vmatpush3.bf16.msra.mxu1 %v1736_v33 }
 0x7ed   :  { %3031 = vmatmul.mubr.bf16.vlgmr.msra.gmra.mxu1 %v3581_v36  ;;  %v3203_v36 = vld [vmem:[%s3897_s3 + $0xc0] sm:$0xff]  }
 0x7ee   :  { %3034 = vmatprep.mubr.bf16.mxu1 %v3587_v38  ;;  %3060 = vmatprep.subr.bf16.mxu0 %v3203_v36  ;;  %v3220_v38 = vmov 0.0  }
 0x7ef   :  { %3061 = vmatpush3.bf16.msra.mxu0 %v3203_v36 }
 0x7f0   :  { %3110 = vmatprep.subr.bf16.mxu0 %v3220_v38 }
 0x7f5   :  { %3035 = vmatmul.mubr.bf16.gmra.mxu1 %v3593_v42  ;;  %v3204_v42 = vld [vmem:[%s3898_s5 + $0xf8] sm:$0xff]  }
 0x7f6   :  { %3038 = vmatprep.mubr.bf16.mxu1 %v3599_v13  ;;  %v3205_v13 = vld [vmem:[%s3898_s5 + $0xf0] sm:$0xff]   ;;  %3078 = vmatprep.subr.bf16.mxu1 %v3204_v42 }
 0x7f7   :  { %3079 = vmatpush3.bf16.msra.mxu1 %v3204_v42 }
 0x7f8   :  { %3080 = vmatprep.subr.bf16.mxu1 %v3205_v13 }
 0x7fb   :  { %3081 = vmatpush3.bf16.msra.mxu1 %v3205_v13 }
 0x7fd   :  { %3039 = vmatmul.mubr.bf16.gmra.mxu1 %v3605_v44  ;;  %v3206_v44 = vld [vmem:[%s3898_s5 + $0xe8] sm:$0xff]  }
 0x7fe   :  { %3042 = vmatprep.mubr.bf16.mxu1 %v3611_v47  ;;  %3082 = vmatprep.subr.bf16.mxu1 %v3206_v44  ;;  %v3207_v47 = vld [vmem:[%s3898_s5 + $0xe0] sm:$0xff]  }
 0x7ff   :  { %3083 = vmatpush3.bf16.msra.mxu1 %v3206_v44 }
 0x800   :  { %3084 = vmatprep.subr.bf16.mxu1 %v3207_v47 }
 0x803   :  { %3085 = vmatpush3.bf16.msra.mxu1 %v3207_v47 }
 0x805   :  { %3043 = vmatmul.mubr.bf16.gmra.mxu1 %v3617_v48  ;;  %v3208_v48 = vld [vmem:[%s3898_s5 + $0xd8] sm:$0xff]  }
 0x806   :  { %3086 = vmatprep.subr.bf16.mxu1 %v3208_v48 }
 0x807   :  { %3087 = vmatpush3.bf16.msra.mxu1 %v3208_v48 }
 0x808   :  { %3088 = vmatprep.subr.bf16.mxu1 %v3209_v21 }
 0x80b   :  { %3089 = vmatpush3.bf16.msra.mxu1 %v3209_v21 }
 0x80c   :  { %3090 = vmatprep.subr.bf16.mxu1 %v3210_v50 }
 0x80f   :  { %3091 = vmatpush3.bf16.msra.mxu1 %v3210_v50 }
 0x810   :  { %3092 = vmatprep.subr.bf16.mxu1 %v3211_v51 }
 0x813   :  { %3093 = vmatpush3.bf16.msra.mxu1 %v3211_v51 }
 0x8ad   :  { %v3032_v63 = vpop.f32.mrf.mxu1 }
 0x8af   :  { %v1778_v0 = vpop.f32.mrf.mxu1 }
 0x8b1   :  { %v3033_v1 = vpop.f32.mrf.mxu1 }
 0x8b2   :  { %v1842_v7 = vpack.c.bf16 %v3033_v1, %v3032_v63 }
 0x8b3   :  { %v1781_v3 = vpop.f32.mrf.mxu1 }
 0x8b4   :  { %v1841_v5 = vpack.c.bf16 %v1781_v3, %v1778_v0 }
 0x8b5   :  { %v3036_v8 = vpop.f32.mrf.mxu1 }
 0x8b6   :  { %3062 = vmatprep.mubr.bf16.mxu0 %v1841_v5 }
 0x8b7   :  { %v1794_v10 = vpop.f32.mrf.mxu1  ;;  %3063 = vmatmul.mubr.bf16.vlgmr.msra.gmra.mxu0 %v1842_v7 }
 0x8b9   :  { %v3037_v11 = vpop.f32.mrf.mxu1 }
 0x8ba   :  { %v1844_v22 = vpack.c.bf16 %v3037_v11, %v3036_v8 }
 0x8bb   :  { %v1797_v4 = vpop.f32.mrf.mxu1 }
 0x8bc   :  { %v1843_v19 = vpack.c.bf16 %v1797_v4, %v1794_v10 }
 0x8bd   :  { %v3040_v25 = vpop.f32.mrf.mxu1 }
 0x8be   :  { %3066 = vmatprep.mubr.bf16.mxu0 %v1843_v19 }
 0x8bf   :  { %v1810_v27 = vpop.f32.mrf.mxu1  ;;  %3067 = vmatmul.mubr.bf16.gmra.mxu0 %v1844_v22 }
 0x8c1   :  { %v3041_v23 = vpop.f32.mrf.mxu1 }
 0x8c2   :  { %v1846_v32 = vpack.c.bf16 %v3041_v23, %v3040_v25 }
 0x8c3   :  { %v1813_v30 = vpop.f32.mrf.mxu1 }
 0x8c4   :  { %v1845_v24 = vpack.c.bf16 %v1813_v30, %v1810_v27 }
 0x8c5   :  { %v3044_v28 = vpop.f32.mrf.mxu1 }
 0x8c6   :  { %3070 = vmatprep.mubr.bf16.mxu0 %v1845_v24 }
 0x8c7   :  { %v1826_v14 = vpop.f32.mrf.mxu1  ;;  %3071 = vmatmul.mubr.bf16.gmra.mxu0 %v1846_v32 }
 0x8c9   :  { %v3045_v15 = vpop.f32.mrf.mxu1 }
 0x8ca   :  { %v1848_v20 = vpack.c.bf16 %v3045_v15, %v3044_v28 }
 0x8cb   :  { %v1829_v17 = vpop.f32.mrf.mxu1 }
 0x8cc   :  { %v1847_v18 = vpack.c.bf16 %v1829_v17, %v1826_v14 }
 0x8ce   :  { %3074 = vmatprep.mubr.bf16.mxu0 %v1847_v18 }
 0x8cf   :  { %3075 = vmatmul.mubr.bf16.gmra.mxu0 %v1848_v20 }
 0x8d0   :  { %3126 = vmatprep.mubr.msk.bf16.mxu0 %vm3221_vm0, %v3220_v38 }
 0x977   :  { %v3064_v53 = vpop.f32.mrf.mxu0 }
 0x978   :  { %v1965_v58 = vadd.f32 %v3064_v53, %v2490_v56 }
 0x979   :  { %v1956_v54 = vpop.f32.mrf.mxu0 }
 0x97a   :  { %v1957_v59 = vadd.f32 %v2490_v56, %v1956_v54  ;;  %v2021_v62 = vmax.f32 %v1965_v58, 0.0 }
 0x97b   :  { %v3065_v43 = vpop.f32.mrf.mxu0 }
 0x97c   :  { %v1968_v26 = vadd.f32 %v3065_v43, %v2490_v56  ;;  %v2019_v61 = vmax.f32 %v1957_v59, 0.0 }
 0x97d   :  { %v1959_v31 = vpop.f32.mrf.mxu0 }
 0x97e   :  { %v1960_v60 = vadd.f32 %v2490_v56, %v1959_v31  ;;  %v2022_v34 = vmax.f32 %v1968_v26, 0.0 }
 0x97f   :  { %v3068_v29 = vpop.f32.mrf.mxu0 }
 0x980   :  { %v2020_v33 = vmax.f32 %v1960_v60, 0.0  ;;  %v2036_v13 = vpack.c.bf16 %v2022_v34, %v2021_v62  ;;  %v1981_v63 = vadd.f32 %v3068_v29, %v2490_v56 }
 0x981   :  { %v1972_v36 = vpop.f32.mrf.mxu0 }
 0x982   :  { %v2035_v42 = vpack.c.bf16 %v2020_v33, %v2019_v61  ;;  %v1973_v47 = vadd.f32 %v2490_v56, %v1972_v36  ;;  %v2025_v10 = vmax.f32 %v1981_v63, 0.0  ;;  %v3778_v61 = vld [vmem:[%s3900_s6 + $0x3] ss:$0 sm:$0xff] }
 0x983   :  { %v3069_v44 = vpop.f32.mrf.mxu0 }
 0x984   :  { %v1984_v48 = vadd.f32 %v3069_v44, %v2490_v56  ;;  %3094 = vmatprep.mubr.bf16.mxu1 %v2035_v42  ;;  %v2023_v7 = vmax.f32 %v1973_v47, 0.0 }
 0x985   :  { %v1975_v0 = vpop.f32.mrf.mxu0  ;;  %3095 = vmatmul.mubr.bf16.vlgmr.msra.gmra.mxu1 %v2036_v13 }
 0x986   :  { %v1976_v1 = vadd.f32 %v2490_v56, %v1975_v0  ;;  %v2026_v3 = vmax.f32 %v1984_v48, 0.0 }
 0x987   :  { %v3072_v5 = vpop.f32.mrf.mxu0 }
 0x988   :  { %v2024_v8 = vmax.f32 %v1976_v1, 0.0  ;;  %v2038_v19 = vpack.c.bf16 %v2026_v3, %v2025_v10  ;;  %v1997_v23 = vadd.f32 %v3072_v5, %v2490_v56 }
 0x989   :  { %v1988_v11 = vpop.f32.mrf.mxu0 }
 0x98a   :  { %v2037_v4 = vpack.c.bf16 %v2024_v8, %v2023_v7  ;;  %v1989_v25 = vadd.f32 %v2490_v56, %v1988_v11  ;;  %v2029_v17 = vmax.f32 %v1997_v23, 0.0 }
 0x98b   :  { %v3073_v22 = vpop.f32.mrf.mxu0 }
 0x98c   :  { %v2000_v27 = vadd.f32 %v3073_v22, %v2490_v56  ;;  %3098 = vmatprep.mubr.bf16.mxu1 %v2037_v4  ;;  %v2027_v14 = vmax.f32 %v1989_v25, 0.0 }
 0x98d   :  { %v1991_v30 = vpop.f32.mrf.mxu0  ;;  %3099 = vmatmul.mubr.bf16.gmra.mxu1 %v2038_v19 }
 0x98e   :  { %v1992_v24 = vadd.f32 %v2490_v56, %v1991_v30  ;;  %v2030_v32 = vmax.f32 %v2000_v27, 0.0 }
 0x98f   :  { %v3076_v28 = vpop.f32.mrf.mxu0 }
 0x990   :  { %v2028_v15 = vmax.f32 %v1992_v24, 0.0  ;;  %v2040_v21 = vpack.c.bf16 %v2030_v32, %v2029_v17  ;;  %v2013_v54 = vadd.f32 %v3076_v28, %v2490_v56 }
 0x991   :  { %v2004_v18 = vpop.f32.mrf.mxu0 }
 0x992   :  { %v2039_v20 = vpack.c.bf16 %v2028_v15, %v2027_v14  ;;  %v2005_v51 = vadd.f32 %v2490_v56, %v2004_v18  ;;  %v2033_v60 = vmax.f32 %v2013_v54, 0.0 }
 0x993   :  { %v3077_v50 = vpop.f32.mrf.mxu0 }
 0x994   :  { %v2016_v53 = vadd.f32 %v3077_v50, %v2490_v56  ;;  %3102 = vmatprep.mubr.bf16.mxu1 %v2039_v20  ;;  %v2031_v58 = vmax.f32 %v2005_v51, 0.0 }
 0x995   :  { %v2007_v43 = vpop.f32.mrf.mxu0  ;;  %3103 = vmatmul.mubr.bf16.gmra.mxu1 %v2040_v21 }
 0x996   :  { %v2008_v59 = vadd.f32 %v2490_v56, %v2007_v43  ;;  %v2034_v26 = vmax.f32 %v2016_v53, 0.0 }
 0x998   :  { %v2032_v31 = vmax.f32 %v2008_v59, 0.0  ;;  %v2042_v29 = vpack.c.bf16 %v2034_v26, %v2033_v60 }
 0x99a   :  { %v2041_v34 = vpack.c.bf16 %v2032_v31, %v2031_v58 }
 0x99c   :  { %3106 = vmatprep.mubr.bf16.mxu1 %v2041_v34 }
 0x99d   :  { %3107 = vmatmul.mubr.bf16.gmra.mxu1 %v2042_v29 }
 0xa45   :  { %v3096_v33 = vpop.f32.mrf.mxu1 }
 0xa46   :  { %v2159_v62 = vadd.f32 %v3096_v33, %v3778_v61 }
 0xa47   :  { %v2150_v56 = vpop.f32.mrf.mxu1 }
 0xa48   :  { %v3782_v36 = vadd.f32 %v2159_v62, %v3681_v2  ;;  %v2151_v42 = vadd.f32 %v3778_v61, %v2150_v56 }
 0xa49   :  { %v3097_v13 = vpop.f32.mrf.mxu1 }
 0xa4a   :  { %2247 = vst [vmem:[%s3901_s7 + $0x10] sm:$0xff] %v3782_v36  ;;  %v3790_v44 = vadd.f32 %v2151_v42, %v3687_v6  ;;  %v2162_v47 = vadd.f32 %v3097_v13, %v3778_v61 }
 0xa4b   :  { %v2153_v48 = vpop.f32.mrf.mxu1 }
 0xa4c   :  { %2245 = vst [vmem:[%s3901_s7] sm:$0xff] %v3790_v44  ;;  %v3798_v2 = vadd.f32 %v2162_v47, %v3690_v9  ;;  %v2154_v63 = vadd.f32 %v3778_v61, %v2153_v48 }
 0xa4d   :  { %v3100_v0 = vpop.f32.mrf.mxu1 }
 0xa4e   :  { %2248 = vst [vmem:[%s3901_s7 + $0x18] sm:$0xff] %v3798_v2  ;;  %v3806_v6 = vadd.f32 %v2154_v63, %v3693_v12  ;;  %v2175_v1 = vadd.f32 %v3100_v0, %v3778_v61  ;;  %v2279_v3 = vpack.c.bf16 %v3798_v2, %v3782_v36 }
 0xa4f   :  { %v2166_v5 = vpop.f32.mrf.mxu1 }
 0xa50   :  { %2246 = vst [vmem:[%s3901_s7 + $0x8] sm:$0xff] %v3806_v6  ;;  %v2235_v9 = vadd.f32 %v2175_v1, %v3696_v16  ;;  %v2167_v7 = vadd.f32 %v3778_v61, %v2166_v5  ;;  %v2278_v8 = vpack.c.bf16 %v3806_v6, %v3790_v44 }
 0xa51   :  { %v3101_v12 = vpop.f32.mrf.mxu1 }
 0xa52   :  { %2251 = vst [vmem:[%s3901_s7 + $0x30] sm:$0xff] %v2235_v9  ;;  %v2233_v10 = vadd.f32 %v2167_v7, %v3699_v49  ;;  %v2178_v11 = vadd.f32 %v3101_v12, %v3778_v61 }
 0xa53   :  { %v2169_v4 = vpop.f32.mrf.mxu1 }
 0xa54   :  { %2249 = vst [vmem:[%s3901_s7 + $0x20] sm:$0xff] %v2233_v10  ;;  %v2236_v16 = vadd.f32 %v2178_v11, %v3702_v52  ;;  %v2170_v19 = vadd.f32 %v3778_v61, %v2169_v4 }
 0xa55   :  { %v3104_v22 = vpop.f32.mrf.mxu1 }
 0xa56   :  { %2252 = vst [vmem:[%s3901_s7 + $0x38] sm:$0xff] %v2236_v16  ;;  %v2234_v25 = vadd.f32 %v2170_v19, %v3705_v55  ;;  %v2191_v49 = vadd.f32 %v3104_v22, %v3778_v61  ;;  %v2281_v27 = vpack.c.bf16 %v2236_v16, %v2235_v9 }
 0xa57   :  { %v2182_v23 = vpop.f32.mrf.mxu1 }
 0xa58   :  { %2250 = vst [vmem:[%s3901_s7 + $0x28] sm:$0xff] %v2234_v25  ;;  %v2239_v30 = vadd.f32 %v2191_v49, %v3708_v57  ;;  %v2183_v52 = vadd.f32 %v3778_v61, %v2182_v23  ;;  %v2280_v24 = vpack.c.bf16 %v2234_v25, %v2233_v10 }
 0xa59   :  { %v3105_v32 = vpop.f32.mrf.mxu1 }
 0xa5a   :  { %2255 = vst [vmem:[%s3901_s7 + $0x50] sm:$0xff] %v2239_v30  ;;  %v2237_v55 = vadd.f32 %v2183_v52, %v3711_v46  ;;  %v2194_v28 = vadd.f32 %v3105_v32, %v3778_v61 }
 0xa5b   :  { %v2185_v14 = vpop.f32.mrf.mxu1 }
 0xa5c   :  { %2253 = vst [vmem:[%s3901_s7 + $0x40] sm:$0xff] %v2237_v55  ;;  %v2240_v15 = vadd.f32 %v2194_v28, %v3714_v41  ;;  %v2186_v57 = vadd.f32 %v3778_v61, %v2185_v14 }
 0xa5d   :  { %v3108_v17 = vpop.f32.mrf.mxu1 }
 0xa5e   :  { %2256 = vst [vmem:[%s3901_s7 + $0x58] sm:$0xff] %v2240_v15  ;;  %v2238_v18 = vadd.f32 %v2186_v57, %v3717_v45  ;;  %v2207_v46 = vadd.f32 %v3108_v17, %v3778_v61  ;;  %v2283_v20 = vpack.c.bf16 %v2240_v15, %v2239_v30 }
 0xa5f   :  { %v2198_v21 = vpop.f32.mrf.mxu1 }
 0xa60   :  { %2254 = vst [vmem:[%s3901_s7 + $0x48] sm:$0xff] %v2238_v18  ;;  %v2243_v50 = vadd.f32 %v2207_v46, %v3720_v37  ;;  %v2199_v41 = vadd.f32 %v3778_v61, %v2198_v21  ;;  %v2282_v51 = vpack.c.bf16 %v2238_v18, %v2237_v55 }
 0xa61   :  { %v3109_v53 = vpop.f32.mrf.mxu1 }
 0xa62   :  { %2259 = vst [vmem:[%s3901_s7 + $0x70] sm:$0xff] %v2243_v50  ;;  %v2241_v45 = vadd.f32 %v2199_v41, %v3723_v40  ;;  %v2210_v54 = vadd.f32 %v3109_v53, %v3778_v61 }
 0xa63   :  { %v2201_v43 = vpop.f32.mrf.mxu1 }
 0xa64   :  { %2257 = vst [vmem:[%s3901_s7 + $0x60] sm:$0xff] %v2241_v45  ;;  %v2244_v59 = vadd.f32 %v2210_v54, %v3726_v35  ;;  %v2202_v37 = vadd.f32 %v3778_v61, %v2201_v43  ;;  %v2261_v35 = vld [vmem:[%s3902_s2] sm:$0xf] }
 0xa66   :  { %2260 = vst [vmem:[%s3901_s7 + $0x78] sm:$0xff] %v2244_v59  ;;  %v2242_v26 = vadd.f32 %v2202_v37, %v3729_v39  ;;  %v2285_v58 = vpack.c.bf16 %v2244_v59, %v2243_v50 }
 0xa68   :  { %2258 = vst [vmem:[%s3901_s7 + $0x68] sm:$0xff] %v2242_v26  ;;  %3111 = vmatpush3.bf16.msra.mxu0 %v2285_v58  ;;  %v2284_v40 = vpack.c.bf16 %v2242_v26, %v2241_v45 }
 0xa69   :  { %3112 = vmatprep.subr.bf16.mxu0 %v3220_v38 }
 0xa6c   :  { %3113 = vmatpush3.bf16.msra.mxu0 %v2284_v40 }
 0xa6d   :  { %3114 = vmatprep.subr.bf16.mxu0 %v3220_v38 }
 0xa70   :  { %3115 = vmatpush3.bf16.msra.mxu0 %v2283_v20 }
 0xa71   :  { %3116 = vmatprep.subr.bf16.mxu0 %v3220_v38 }
 0xa74   :  { %3117 = vmatpush3.bf16.msra.mxu0 %v2282_v51 }
 0xa75   :  { %3118 = vmatprep.subr.bf16.mxu0 %v3220_v38 }
 0xa78   :  { %3119 = vmatpush3.bf16.msra.mxu0 %v2281_v27 }
 0xa79   :  { %3120 = vmatprep.subr.bf16.mxu0 %v3220_v38 }
 0xa7c   :  { %3121 = vmatpush3.bf16.msra.mxu0 %v2280_v24 }
 0xa7d   :  { %3122 = vmatprep.subr.bf16.mxu0 %v3220_v38 }
 0xa80   :  { %3123 = vmatpush3.bf16.msra.mxu0 %v2279_v3 }
 0xa81   :  { %3124 = vmatprep.subr.bf16.mxu0 %v3220_v38 }
 0xa84   :  { %3125 = vmatpush3.bf16.msra.mxu0 %v2278_v8 }
 0xa87   :  { %3127 = vmatmul.mubr.bf16.vlgmr.msra.gmra.mxu0 %v2261_v35 }
 0xb47   :  { %v2320_v39 = vpop.f32.mrf.mxu0 }
 0xb48   :  { %2326 = vst [vmem:[%s3903_s8] sm:$0xff] %v2320_v39 }
 0xb49   :  { %v3128_v31 = vpop.f32.mrf.mxu0 }
 0xb4b   :  { %v2323_v60 = vpop.f32.mrf.mxu0 }
 0xb4d   :  { %v3129_v34 = vpop.f32.mrf.mxu0 }

</bundles_post_ra>
